<compile_context>
chip_gen: v7x
topology: tpu7x:2x2x1
jax: 0.10.0
libtpu: 0.0.40
codegen_flags: <defaults>
</compile_context>

<pallas_src>
import functools
import math

import jax
import jax.numpy as jnp
from jax.experimental import pallas as pl
from jax.experimental.pallas import tpu as pltpu


# ---------------------------------------------------------------------------
# Pallas kernel: one bidirectional LSTM layer, both directions interleaved.
#   grid = (time-chunk,)
#   xf_ref  : (TT*B, D)   forward-chain input chunk k (original time order)
#   xb_ref  : (TT*B, D)   backward-chain input chunk nc-1-k (original time order)
#   wih_ref : (2, D, 4H)  per-direction input weights (compute dtype)
#   whh_ref : (2, H, 4H)  per-direction recurrent weights (compute dtype)
#   bias_ref: (2, 1, 4H)  fused b_ih + b_hh per direction (f32)
#   outf_ref: (TT*B, H)   forward hidden states, chunk k
#   outb_ref: (TT*B, H)   backward hidden states, chunk nc-1-k (original time order)
# ---------------------------------------------------------------------------
def _bilstm_layer_kernel(xf_ref, xb_ref, wih_ref, whh_ref, bias_ref,
                         outf_ref, outb_ref,
                         h_scr, c_scr, gxf_scr, gxb_scr,
                         *, seq_len, chunk, nc):
    k = pl.program_id(0)
    B, H = h_scr.shape[1], h_scr.shape[2]
    TT = chunk
    cdt = whh_ref.dtype

    @pl.when(k == 0)              # reset carried state at the start of the sequence
    def _():
        h_scr[...] = jnp.zeros_like(h_scr)
        c_scr[...] = jnp.zeros_like(c_scr)

    wih_f, wih_b = wih_ref[0], wih_ref[1]        # (D, 4H)
    whh_f, whh_b = whh_ref[0], whh_ref[1]        # (H, 4H)
    bias_f, bias_b = bias_ref[0], bias_ref[1]    # (1, 4H) f32

    # Hoisted input projection: one big MXU matmul per direction per chunk.
    # gx is produced directly in VMEM scratch; it never touches HBM.
    gxf_scr[...] = jnp.dot(xf_ref[...].astype(cdt), wih_f,
                           preferred_element_type=jnp.float32) + bias_f
    gxb_scr[...] = jnp.dot(xb_ref[...].astype(cdt), wih_b,
                           preferred_element_type=jnp.float32) + bias_b

    masked = (nc * TT) != seq_len   # static Python bool (only when T was padded)

    def cell(gx, h, c, whh):
        gates = gx + jnp.dot(h.astype(cdt), whh, preferred_element_type=jnp.float32)
        i_g = jax.nn.sigmoid(gates[:, 0 * H:1 * H])
        f_g = jax.nn.sigmoid(gates[:, 1 * H:2 * H])
        g_g = jnp.tanh(gates[:, 2 * H:3 * H])
        o_g = jax.nn.sigmoid(gates[:, 3 * H:4 * H])
        c_new = f_g * c + i_g * g_g
        h_new = o_g * jnp.tanh(c_new)
        return h_new, c_new

    def step(s, carry):
        # h/c live in the loop carry (vregs) -> no per-step VMEM roundtrips.
        hf, cf, hb, cb = carry
        rf = s * B                  # forward: in-chunk time s
        rb = (TT - 1 - s) * B       # backward walks its chunk in reverse
        gx_f = gxf_scr[pl.ds(rf, B), :]
        gx_b = gxb_scr[pl.ds(rb, B), :]
        hf_n, cf_n = cell(gx_f, hf, cf, whh_f)
        hb_n, cb_n = cell(gx_b, hb, cb, whh_b)
        if masked:
            # Padded timesteps (global time >= seq_len) must not advance the state.
            mf = ((k * TT + s) < seq_len).astype(jnp.float32)
            mb = (((nc - 1 - k) * TT + (TT - 1 - s)) < seq_len).astype(jnp.float32)
            hf_n = hf + mf * (hf_n - hf)
            cf_n = cf + mf * (cf_n - cf)
            hb_n = hb + mb * (hb_n - hb)
            cb_n = cb + mb * (cb_n - cb)
        outf_ref[pl.ds(rf, B), :] = hf_n.astype(outf_ref.dtype)
        outb_ref[pl.ds(rb, B), :] = hb_n.astype(outb_ref.dtype)
        return hf_n, cf_n, hb_n, cb_n

    carry0 = (h_scr[0], c_scr[0], h_scr[1], c_scr[1])
    unroll = True if TT <= 8 else 2          # modest unroll: avoid vreg-pressure blowup
    hf, cf, hb, cb = jax.lax.fori_loop(0, TT, step, carry0, unroll=unroll)

    # Write the carried state back once per chunk.
    h_scr[0] = hf
    c_scr[0] = cf
    h_scr[1] = hb
    c_scr[1] = cb


def _vmem_budget_bytes(frac=0.75, fallback=48 * 1024 * 1024):
    """Per-generation VMEM budget with headroom (never the full physical VMEM)."""
    try:
        cap = int(pltpu.get_tpu_info().vmem_capacity_bytes)
        if cap > 0:
            return int(cap * frac)
    except Exception:
        pass
    return fallback


def _pick_time_chunk(T, B, time_chunk):
    """Chunk length TT such that (TT*B) % 8 == 0; T is padded up to nc*TT."""
    g = 8 // math.gcd(B, 8)
    tt = max(1, min(time_chunk, T))
    tt = ((tt + g - 1) // g) * g
    nc = (T + tt - 1) // tt
    return tt, nc


def bilstm_layer_pallas(xf, xb, wih, whh, bias, *, hidden_size, out_dtype, time_chunk):
    """One bidirectional LSTM layer (both directions interleaved in one kernel).

    xf, xb : (T, B, D) inputs for the forward / backward chains, original time order
             (layer 0 passes the same tensor twice).
    wih    : (2, D, 4H) pre-transposed per-direction input weights (compute dtype)
    whh    : (2, H, 4H) pre-transposed per-direction recurrent weights (compute dtype)
    bias   : (2, 1, 4H) fused b_ih + b_hh per direction (f32)
    Returns (out_f, out_b), each (T, B, H) in out_dtype, in ORIGINAL time order.
    """
    T, B, D = xf.shape
    H = hidden_size
    TT, nc = _pick_time_chunk(T, B, time_chunk)
    T_pad = nc * TT

    xf2 = xf.reshape(T * B, D)
    xb2 = xb.reshape(T * B, D)
    if T_pad != T:
        pad_rows = (T_pad - T) * B
        xf2 = jnp.pad(xf2, ((0, pad_rows), (0, 0)))
        xb2 = jnp.pad(xb2, ((0, pad_rows), (0, 0)))

    kernel = functools.partial(_bilstm_layer_kernel, seq_len=T, chunk=TT, nc=nc)

    out_f, out_b = pl.pallas_call(
        kernel,
        out_shape=(jax.ShapeDtypeStruct((T_pad * B, H), out_dtype),
                   jax.ShapeDtypeStruct((T_pad * B, H), out_dtype)),
        grid=(nc,),
        in_specs=[
            pl.BlockSpec((TT * B, D), lambda k: (k, 0)),              # forward chunk k
            pl.BlockSpec((TT * B, D), lambda k: (nc - 1 - k, 0)),     # backward chunk (reversed)
            pl.BlockSpec((2, D, 4 * H), lambda k: (0, 0, 0)),
            pl.BlockSpec((2, H, 4 * H), lambda k: (0, 0, 0)),
            pl.BlockSpec((2, 1, 4 * H), lambda k: (0, 0, 0)),
        ],
        out_specs=(
            pl.BlockSpec((TT * B, H), lambda k: (k, 0)),
            pl.BlockSpec((TT * B, H), lambda k: (nc - 1 - k, 0)),
        ),
        scratch_shapes=[
            pltpu.VMEM((2, B, H), jnp.float32),          # h carry (fwd, bwd), f32
            pltpu.VMEM((2, B, H), jnp.float32),          # c carry (fwd, bwd), f32
            pltpu.VMEM((TT * B, 4 * H), jnp.float32),    # per-chunk gx, forward
            pltpu.VMEM((TT * B, 4 * H), jnp.float32),    # per-chunk gx, backward
        ],
        compiler_params=pltpu.CompilerParams(
            dimension_semantics=("arbitrary",),          # time is sequential
            vmem_limit_bytes=_vmem_budget_bytes(),
        ),
    )(xf2, xb2, wih, whh, bias)

    out_f = out_f.reshape(T_pad, B, H)[:T]
    out_b = out_b.reshape(T_pad, B, H)[:T]
    return out_f, out_b


# ---------------------------------------------------------------------------
# Full bidirectional encoder (layer stacking / weight prep in plain JAX)
# ---------------------------------------------------------------------------
def init_params(key, input_size, hidden_size, num_layers):
    params_f, params_b = [], []
    d = input_size
    bound = 1.0 / jnp.sqrt(jnp.float32(hidden_size))
    for _ in range(num_layers):
        for params in (params_f, params_b):
            key, k1, k2, k3, k4 = jax.random.split(key, 5)
            params.append(dict(
                w_ih=jax.random.uniform(k1, (4 * hidden_size, d), jnp.float32, -bound, bound),
                w_hh=jax.random.uniform(k2, (4 * hidden_size, hidden_size), jnp.float32, -bound, bound),
                b_ih=jax.random.uniform(k3, (4 * hidden_size,), jnp.float32, -bound, bound),
                b_hh=jax.random.uniform(k4, (4 * hidden_size,), jnp.float32, -bound, bound),
            ))
        d = hidden_size
    return params_f, params_b


@functools.partial(jax.jit, static_argnames=("compute_dtype", "time_chunk"))
def bidirectional_lstm_encoder(x, params_f, params_b,
                               compute_dtype=jnp.bfloat16, time_chunk=32):
    """x: (B, T, input_size). Returns (out (B,T,2H), (h (L,B,2H), c (L,B,2H)))."""
    num_layers = len(params_f)
    B, T, _ = x.shape
    x_tm = jnp.transpose(x, (1, 0, 2)).astype(compute_dtype)    # (T, B, D) time-major

    xf = x_tm                     # forward-chain input (both chains share layer-0 input)
    xb = x_tm                     # backward-chain input
    h_parts = []
    for j in range(num_layers):
        pf, pb = params_f[j], params_b[j]
        H = pf["w_hh"].shape[1]
        wih = jnp.stack([pf["w_ih"].T, pb["w_ih"].T], axis=0).astype(compute_dtype)
        whh = jnp.stack([pf["w_hh"].T, pb["w_hh"].T], axis=0).astype(compute_dtype)
        bias = jnp.stack([pf["b_ih"] + pf["b_hh"], pb["b_ih"] + pb["b_hh"]], axis=0)
        bias = bias[:, None, :].astype(jnp.float32)              # (2, 1, 4H)

        last = (j == num_layers - 1)
        out_dtype = jnp.float32 if last else compute_dtype       # bf16 inter-layer HBM
        out_f, out_b = bilstm_layer_pallas(
            xf, xb, wih, whh, bias, hidden_size=H,
            out_dtype=out_dtype, time_chunk=time_chunk)          # each (T, B, H)

        # final hidden: forward at original time T-1; backward (un-reversed) at time 0
        h_parts.append(jnp.concatenate(
            [out_f[T - 1].astype(jnp.float32), out_b[0].astype(jnp.float32)], axis=-1))
        xf, xb = out_f, out_b

    out = jnp.concatenate([xf.astype(jnp.float32), xb.astype(jnp.float32)], axis=-1)
    out = jnp.transpose(out, (1, 0, 2))                          # (B, T, 2H)
    h = jnp.stack(h_parts, axis=0)                               # (L, B, 2H)
    c = h                                                        # reproduces c-from-h bug
    return out, (h, c)


# ---------------------------------------------------------------------------
# Pure-JAX reference (mirrors the PyTorch forward exactly) for verification
# ---------------------------------------------------------------------------
def _cell_ref(x, h, c, p):
    g = x @ p["w_ih"].T + p["b_ih"] + h @ p["w_hh"].T + p["b_hh"]
    H = h.shape[-1]
    i = jax.nn.sigmoid(g[:, 0 * H:1 * H])
    f = jax.nn.sigmoid(g[:, 1 * H:2 * H])
    gg = jnp.tanh(g[:, 2 * H:3 * H])
    o = jax.nn.sigmoid(g[:, 3 * H:4 * H])
    c_new = f * c + i * gg
    h_new = o * jnp.tanh(c_new)
    return h_new, c_new


def reference_forward(x, params_f, params_b, hidden_size):
    B, T, _ = x.shape
    L = len(params_f)
    h0 = jnp.zeros((B, hidden_size), jnp.float32)
    h_f_n, h_b_n = [h0] * L, [h0] * L
    c_f_n, c_b_n = [h0] * L, [h0] * L
    rx = x[:, ::-1, :]
    out_f, out_b = [], []
    for i in range(T):
        xf, xb = x[:, i, :], rx[:, i, :]
        for j in range(L):
            xf, cf = _cell_ref(xf, h_f_n[j], c_f_n[j], params_f[j])
            xb, cb = _cell_ref(xb, h_b_n[j], c_b_n[j], params_b[j])
            h_f_n[j], h_b_n[j], c_f_n[j], c_b_n[j] = xf, xb, cf, cb
        out_f.append(xf)
        out_b.append(xb)
    out_f = jnp.stack(out_f, axis=1)
    out_b = jnp.stack(out_b, axis=1)[:, ::-1, :]
    out = jnp.concatenate([out_f, out_b], axis=2)
    h = jnp.concatenate([jnp.stack(h_f_n), jnp.stack(h_b_n)], axis=2)
    c = jnp.concatenate([jnp.stack(h_f_n), jnp.stack(h_b_n)], axis=2)
    return out, (h, c)


if __name__ == "__main__":
    B, T, D, H, L = 2, 8, 16, 32, 2

    key = jax.random.PRNGKey(0)
    key, kx, kp, kx2 = jax.random.split(key, 4)
    x = jax.random.normal(kx, (B, T, D), jnp.float32)
    params_f, params_b = init_params(kp, D, H, L)

    out_r, (h_r, c_r) = reference_forward(x, params_f, params_b, H)

    # f32 MXU-operand path, several time chunks (exercises cross-chunk state carry).
    out32, (h32, c32) = bidirectional_lstm_encoder(
        x, params_f, params_b, compute_dtype=jnp.float32, time_chunk=4)
    jax.block_until_ready((out32, h32, c32))
    assert out32.shape == (B, T, 2 * H)
    assert h32.shape == (L, B, 2 * H) and c32.shape == (L, B, 2 * H)
    assert jnp.allclose(out32, out_r, atol=1e-3, rtol=1e-3)
    assert jnp.allclose(h32, h_r, atol=1e-3, rtol=1e-3)
    assert jnp.allclose(c32, c_r, atol=1e-3, rtol=1e-3)

    # Default bf16 MXU-operand path (f32 accumulation, f32 h/c state) -> looser tolerance.
    out_bf, (h_bf, c_bf) = bidirectional_lstm_encoder(x, params_f, params_b)
    jax.block_until_ready((out_bf, h_bf, c_bf))
    assert jnp.allclose(out_bf, out_r, atol=5e-2, rtol=5e-2)
    assert jnp.allclose(h_bf, h_r, atol=5e-2, rtol=5e-2)

    # Ragged-T path: T=6 with chunk 4 -> padded to 8 + in-kernel masking of padded steps.
    T2 = 6
    x2 = jax.random.normal(kx2, (B, T2, D), jnp.float32)
    out_r2, (h_r2, _) = reference_forward(x2, params_f, params_b, H)
    out2, (h2, _) = bidirectional_lstm_encoder(
        x2, params_f, params_b, compute_dtype=jnp.float32, time_chunk=4)
    jax.block_until_ready((out2, h2))
    assert jnp.allclose(out2, out_r2, atol=1e-3, rtol=1e-3)
    assert jnp.allclose(h2, h_r2, atol=1e-3, rtol=1e-3)

    print("KERNEL_OK")
</pallas_src>

<mosaic_0001>
module attributes {stable_mosaic.version = 11 : i64} {
  func.func @_bilstm_layer_kernel(%arg0: i32, %arg1: memref<8x32xf32, #tpu.memory_space<vmem>>, %arg2: memref<8x32xf32, #tpu.memory_space<vmem>>, %arg3: memref<2x32x128xf32, #tpu.memory_space<vmem>>, %arg4: memref<2x32x128xf32, #tpu.memory_space<vmem>>, %arg5: memref<2x1x128xf32, #tpu.memory_space<vmem>>, %arg6: memref<8x32xf32, #tpu.memory_space<vmem>>, %arg7: memref<8x32xf32, #tpu.memory_space<vmem>>, %arg8: memref<2x2x32xf32, #tpu.memory_space<vmem>>, %arg9: memref<2x2x32xf32, #tpu.memory_space<vmem>>, %arg10: memref<8x128xf32, #tpu.memory_space<vmem>>, %arg11: memref<8x128xf32, #tpu.memory_space<vmem>>) attributes {dimension_semantics = [#tpu.dimension_semantics<arbitrary>], iteration_bounds = array<i64: 2>, scalar_prefetch = 0 : i64, scratch_operands = 4 : i64, tpu.core_type = #tpu.core_type<tc>, window_params = [{transform_indices = @transform_0, window_bounds = array<i64: 8, 32>}, {transform_indices = @transform_1, window_bounds = array<i64: 8, 32>}, {pipeline_mode = #tpu.pipeline_mode<synchronous>, transform_indices = @transform_2, window_bounds = array<i64: 2, 32, 128>}, {pipeline_mode = #tpu.pipeline_mode<synchronous>, transform_indices = @transform_3, window_bounds = array<i64: 2, 32, 128>}, {pipeline_mode = #tpu.pipeline_mode<synchronous>, transform_indices = @transform_4, window_bounds = array<i64: 2, 1, 128>}, {transform_indices = @transform_5, window_bounds = array<i64: 8, 32>}, {transform_indices = @transform_6, window_bounds = array<i64: 8, 32>}]} {
    %c0_i32 = arith.constant 0 : i32
    %0 = arith.cmpi eq, %arg0, %c0_i32 : i32
    %1 = arith.extui %0 : i1 to i32
    %c0_i32_0 = arith.constant 0 : i32
    %2 = arith.cmpi ne, %1, %c0_i32_0 : i32
    scf.if %2 {
      %cst_111 = arith.constant 0.000000e+00 : f32
      %305 = vector.broadcast %cst_111 : f32 to vector<2x2x32xf32>
      %c0_112 = arith.constant 0 : index
      %c0_113 = arith.constant 0 : index
      %c0_114 = arith.constant 0 : index
      %306 = vector.load %arg8[%c0_112, %c0_113, %c0_114] : memref<2x2x32xf32, #tpu.memory_space<vmem>>, vector<2x2x32xf32>
      tpu.vector_store %arg8[%c0_112, %c0_113, %c0_114], %305 {strides = array<i32>} : memref<2x2x32xf32, #tpu.memory_space<vmem>>, vector<2x2x32xf32>,
      %cst_115 = arith.constant 0.000000e+00 : f32
      %307 = vector.broadcast %cst_115 : f32 to vector<2x2x32xf32>
      %c0_116 = arith.constant 0 : index
      %c0_117 = arith.constant 0 : index
      %c0_118 = arith.constant 0 : index
      %308 = vector.load %arg9[%c0_116, %c0_117, %c0_118] : memref<2x2x32xf32, #tpu.memory_space<vmem>>, vector<2x2x32xf32>
      tpu.vector_store %arg9[%c0_116, %c0_117, %c0_118], %307 {strides = array<i32>} : memref<2x2x32xf32, #tpu.memory_space<vmem>>, vector<2x2x32xf32>,
    } else {
    }
    %c0 = arith.constant 0 : index
    %c0_1 = arith.constant 0 : index
    %c0_2 = arith.constant 0 : index
    %3 = vector.load %arg3[%c0, %c0_1, %c0_2] : memref<2x32x128xf32, #tpu.memory_space<vmem>>, vector<1x32x128xf32>
    %4 = vector.shape_cast %3 : vector<1x32x128xf32> to vector<32x128xf32>
    %c1 = arith.constant 1 : index
    %c0_3 = arith.constant 0 : index
    %c0_4 = arith.constant 0 : index
    %5 = vector.load %arg3[%c1, %c0_3, %c0_4] : memref<2x32x128xf32, #tpu.memory_space<vmem>>, vector<1x32x128xf32>
    %6 = vector.shape_cast %5 : vector<1x32x128xf32> to vector<32x128xf32>
    %c0_5 = arith.constant 0 : index
    %c0_6 = arith.constant 0 : index
    %c0_7 = arith.constant 0 : index
    %7 = vector.load %arg4[%c0_5, %c0_6, %c0_7] : memref<2x32x128xf32, #tpu.memory_space<vmem>>, vector<1x32x128xf32>
    %8 = vector.shape_cast %7 : vector<1x32x128xf32> to vector<32x128xf32>
    %c1_8 = arith.constant 1 : index
    %c0_9 = arith.constant 0 : index
    %c0_10 = arith.constant 0 : index
    %9 = vector.load %arg4[%c1_8, %c0_9, %c0_10] : memref<2x32x128xf32, #tpu.memory_space<vmem>>, vector<1x32x128xf32>
    %10 = vector.shape_cast %9 : vector<1x32x128xf32> to vector<32x128xf32>
    %c0_11 = arith.constant 0 : index
    %c0_12 = arith.constant 0 : index
    %c0_13 = arith.constant 0 : index
    %11 = vector.load %arg5[%c0_11, %c0_12, %c0_13] : memref<2x1x128xf32, #tpu.memory_space<vmem>>, vector<1x1x128xf32>
    %12 = vector.shape_cast %11 : vector<1x1x128xf32> to vector<1x128xf32>
    %c1_14 = arith.constant 1 : index
    %c0_15 = arith.constant 0 : index
    %c0_16 = arith.constant 0 : index
    %13 = vector.load %arg5[%c1_14, %c0_15, %c0_16] : memref<2x1x128xf32, #tpu.memory_space<vmem>>, vector<1x1x128xf32>
    %14 = vector.shape_cast %13 : vector<1x1x128xf32> to vector<1x128xf32>
    %c0_17 = arith.constant 0 : index
    %c0_18 = arith.constant 0 : index
    %15 = vector.load %arg1[%c0_17, %c0_18] : memref<8x32xf32, #tpu.memory_space<vmem>>, vector<8x32xf32>
    %cst = arith.constant dense<0.000000e+00> : vector<8x128xf32>
    %16 = tpu.matmul %15, %4, %cst {dimension_numbers = #tpu.dot_dimension_numbers<[1], [0], [0], [1], [0, 0, 1, 1], [], []>} : vector<8x32xf32>, vector<32x128xf32>, vector<8x128xf32> -> vector<8x128xf32>
    %17 = vector.broadcast %12 : vector<1x128xf32> to vector<8x128xf32>
    %18 = arith.addf %16, %17 : vector<8x128xf32>
    %c0_19 = arith.constant 0 : index
    %c0_20 = arith.constant 0 : index
    %19 = vector.load %arg10[%c0_19, %c0_20] : memref<8x128xf32, #tpu.memory_space<vmem>>, vector<8x128xf32>
    tpu.vector_store %arg10[%c0_19, %c0_20], %18 {strides = array<i32>} : memref<8x128xf32, #tpu.memory_space<vmem>>, vector<8x128xf32>,
    %c0_21 = arith.constant 0 : index
    %c0_22 = arith.constant 0 : index
    %20 = vector.load %arg2[%c0_21, %c0_22] : memref<8x32xf32, #tpu.memory_space<vmem>>, vector<8x32xf32>
    %cst_23 = arith.constant dense<0.000000e+00> : vector<8x128xf32>
    %21 = tpu.matmul %20, %6, %cst_23 {dimension_numbers = #tpu.dot_dimension_numbers<[1], [0], [0], [1], [0, 0, 1, 1], [], []>} : vector<8x32xf32>, vector<32x128xf32>, vector<8x128xf32> -> vector<8x128xf32>
    %22 = vector.broadcast %14 : vector<1x128xf32> to vector<8x128xf32>
    %23 = arith.addf %21, %22 : vector<8x128xf32>
    %c0_24 = arith.constant 0 : index
    %c0_25 = arith.constant 0 : index
    %24 = vector.load %arg11[%c0_24, %c0_25] : memref<8x128xf32, #tpu.memory_space<vmem>>, vector<8x128xf32>
    tpu.vector_store %arg11[%c0_24, %c0_25], %23 {strides = array<i32>} : memref<8x128xf32, #tpu.memory_space<vmem>>, vector<8x128xf32>,
    %c0_26 = arith.constant 0 : index
    %c0_27 = arith.constant 0 : index
    %c0_28 = arith.constant 0 : index
    %25 = vector.load %arg8[%c0_26, %c0_27, %c0_28] : memref<2x2x32xf32, #tpu.memory_space<vmem>>, vector<1x2x32xf32>
    %26 = vector.shape_cast %25 : vector<1x2x32xf32> to vector<2x32xf32>
    %c0_29 = arith.constant 0 : index
    %c0_30 = arith.constant 0 : index
    %c0_31 = arith.constant 0 : index
    %27 = vector.load %arg9[%c0_29, %c0_30, %c0_31] : memref<2x2x32xf32, #tpu.memory_space<vmem>>, vector<1x2x32xf32>
    %28 = vector.shape_cast %27 : vector<1x2x32xf32> to vector<2x32xf32>
    %c1_32 = arith.constant 1 : index
    %c0_33 = arith.constant 0 : index
    %c0_34 = arith.constant 0 : index
    %29 = vector.load %arg8[%c1_32, %c0_33, %c0_34] : memref<2x2x32xf32, #tpu.memory_space<vmem>>, vector<1x2x32xf32>
    %30 = vector.shape_cast %29 : vector<1x2x32xf32> to vector<2x32xf32>
    %c1_35 = arith.constant 1 : index
    %c0_36 = arith.constant 0 : index
    %c0_37 = arith.constant 0 : index
    %31 = vector.load %arg9[%c1_35, %c0_36, %c0_37] : memref<2x2x32xf32, #tpu.memory_space<vmem>>, vector<1x2x32xf32>
    %32 = vector.shape_cast %31 : vector<1x2x32xf32> to vector<2x32xf32>
    %c0_i32_38 = arith.constant 0 : i32
    %c2_i32 = arith.constant 2 : i32
    %33 = arith.muli %c0_i32_38, %c2_i32 : i32
    %c3_i32 = arith.constant 3 : i32
    %34 = arith.subi %c3_i32, %c0_i32_38 : i32
    %c2_i32_39 = arith.constant 2 : i32
    %35 = arith.muli %34, %c2_i32_39 : i32
    %36 = arith.index_cast %33 : i32 to index
    %c0_40 = arith.constant 0 : index
    %37 = vector.load %arg10[%36, %c0_40] : memref<8x128xf32, #tpu.memory_space<vmem>>, vector<2x128xf32>
    %38 = arith.index_cast %35 : i32 to index
    %c0_41 = arith.constant 0 : index
    %39 = vector.load %arg11[%38, %c0_41] : memref<8x128xf32, #tpu.memory_space<vmem>>, vector<2x128xf32>
    %cst_42 = arith.constant dense<0.000000e+00> : vector<2x128xf32>
    %40 = tpu.matmul %26, %8, %cst_42 {dimension_numbers = #tpu.dot_dimension_numbers<[1], [0], [0], [1], [0, 0, 1, 1], [], []>} : vector<2x32xf32>, vector<32x128xf32>, vector<2x128xf32> -> vector<2x128xf32>
    %41 = arith.addf %37, %40 : vector<2x128xf32>
    %42 = vector.extract_strided_slice %41 {offsets = [0, 0], sizes = [2, 32], strides = [1, 1]} : vector<2x128xf32> to vector<2x32xf32>
    %43 = arith.negf %42 : vector<2x32xf32>
    %44 = math.exp %43 : vector<2x32xf32>
    %cst_43 = arith.constant 1.000000e+00 : f32
    %45 = vector.broadcast %cst_43 : f32 to vector<2x32xf32>
    %46 = arith.addf %45, %44 : vector<2x32xf32>
    %47 = arith.divf %45, %46 : vector<2x32xf32>
    %48 = vector.extract_strided_slice %41 {offsets = [0, 32], sizes = [2, 32], strides = [1, 1]} : vector<2x128xf32> to vector<2x32xf32>
    %49 = arith.negf %48 : vector<2x32xf32>
    %50 = math.exp %49 : vector<2x32xf32>
    %cst_44 = arith.constant 1.000000e+00 : f32
    %51 = vector.broadcast %cst_44 : f32 to vector<2x32xf32>
    %52 = arith.addf %51, %50 : vector<2x32xf32>
    %53 = arith.divf %51, %52 : vector<2x32xf32>
    %54 = vector.extract_strided_slice %41 {offsets = [0, 64], sizes = [2, 32], strides = [1, 1]} : vector<2x128xf32> to vector<2x32xf32>
    %55 = math.tanh %54 : vector<2x32xf32>
    %56 = vector.extract_strided_slice %41 {offsets = [0, 96], sizes = [2, 32], strides = [1, 1]} : vector<2x128xf32> to vector<2x32xf32>
    %57 = arith.negf %56 : vector<2x32xf32>
    %58 = math.exp %57 : vector<2x32xf32>
    %cst_45 = arith.constant 1.000000e+00 : f32
    %59 = vector.broadcast %cst_45 : f32 to vector<2x32xf32>
    %60 = arith.addf %59, %58 : vector<2x32xf32>
    %61 = arith.divf %59, %60 : vector<2x32xf32>
    %62 = arith.mulf %53, %28 : vector<2x32xf32>
    %63 = arith.mulf %47, %55 : vector<2x32xf32>
    %64 = arith.addf %62, %63 : vector<2x32xf32>
    %65 = math.tanh %64 : vector<2x32xf32>
    %66 = arith.mulf %61, %65 : vector<2x32xf32>
    %cst_46 = arith.constant dense<0.000000e+00> : vector<2x128xf32>
    %67 = tpu.matmul %30, %10, %cst_46 {dimension_numbers = #tpu.dot_dimension_numbers<[1], [0], [0], [1], [0, 0, 1, 1], [], []>} : vector<2x32xf32>, vector<32x128xf32>, vector<2x128xf32> -> vector<2x128xf32>
    %68 = arith.addf %39, %67 : vector<2x128xf32>
    %69 = vector.extract_strided_slice %68 {offsets = [0, 0], sizes = [2, 32], strides = [1, 1]} : vector<2x128xf32> to vector<2x32xf32>
    %70 = arith.negf %69 : vector<2x32xf32>
    %71 = math.exp %70 : vector<2x32xf32>
    %cst_47 = arith.constant 1.000000e+00 : f32
    %72 = vector.broadcast %cst_47 : f32 to vector<2x32xf32>
    %73 = arith.addf %72, %71 : vector<2x32xf32>
    %74 = arith.divf %72, %73 : vector<2x32xf32>
    %75 = vector.extract_strided_slice %68 {offsets = [0, 32], sizes = [2, 32], strides = [1, 1]} : vector<2x128xf32> to vector<2x32xf32>
    %76 = arith.negf %75 : vector<2x32xf32>
    %77 = math.exp %76 : vector<2x32xf32>
    %cst_48 = arith.constant 1.000000e+00 : f32
    %78 = vector.broadcast %cst_48 : f32 to vector<2x32xf32>
    %79 = arith.addf %78, %77 : vector<2x32xf32>
    %80 = arith.divf %78, %79 : vector<2x32xf32>
    %81 = vector.extract_strided_slice %68 {offsets = [0, 64], sizes = [2, 32], strides = [1, 1]} : vector<2x128xf32> to vector<2x32xf32>
    %82 = math.tanh %81 : vector<2x32xf32>
    %83 = vector.extract_strided_slice %68 {offsets = [0, 96], sizes = [2, 32], strides = [1, 1]} : vector<2x128xf32> to vector<2x32xf32>
    %84 = arith.negf %83 : vector<2x32xf32>
    %85 = math.exp %84 : vector<2x32xf32>
    %cst_49 = arith.constant 1.000000e+00 : f32
    %86 = vector.broadcast %cst_49 : f32 to vector<2x32xf32>
    %87 = arith.addf %86, %85 : vector<2x32xf32>
    %88 = arith.divf %86, %87 : vector<2x32xf32>
    %89 = arith.mulf %80, %32 : vector<2x32xf32>
    %90 = arith.mulf %74, %82 : vector<2x32xf32>
    %91 = arith.addf %89, %90 : vector<2x32xf32>
    %92 = math.tanh %91 : vector<2x32xf32>
    %93 = arith.mulf %88, %92 : vector<2x32xf32>
    %94 = arith.index_cast %33 : i32 to index
    %c0_50 = arith.constant 0 : index
    %95 = vector.load %arg6[%94, %c0_50] : memref<8x32xf32, #tpu.memory_space<vmem>>, vector<2x32xf32>
    tpu.vector_store %arg6[%94, %c0_50], %66 {strides = array<i32>} : memref<8x32xf32, #tpu.memory_space<vmem>>, vector<2x32xf32>,
    %96 = arith.index_cast %35 : i32 to index
    %c0_51 = arith.constant 0 : index
    %97 = vector.load %arg7[%96, %c0_51] : memref<8x32xf32, #tpu.memory_space<vmem>>, vector<2x32xf32>
    tpu.vector_store %arg7[%96, %c0_51], %93 {strides = array<i32>} : memref<8x32xf32, #tpu.memory_space<vmem>>, vector<2x32xf32>,
    %c1_i32 = arith.constant 1 : i32
    %c2_i32_52 = arith.constant 2 : i32
    %98 = arith.muli %c1_i32, %c2_i32_52 : i32
    %c3_i32_53 = arith.constant 3 : i32
    %99 = arith.subi %c3_i32_53, %c1_i32 : i32
    %c2_i32_54 = arith.constant 2 : i32
    %100 = arith.muli %99, %c2_i32_54 : i32
    %101 = arith.index_cast %98 : i32 to index
    %c0_55 = arith.constant 0 : index
    %102 = vector.load %arg10[%101, %c0_55] : memref<8x128xf32, #tpu.memory_space<vmem>>, vector<2x128xf32>
    %103 = arith.index_cast %100 : i32 to index
    %c0_56 = arith.constant 0 : index
    %104 = vector.load %arg11[%103, %c0_56] : memref<8x128xf32, #tpu.memory_space<vmem>>, vector<2x128xf32>
    %cst_57 = arith.constant dense<0.000000e+00> : vector<2x128xf32>
    %105 = tpu.matmul %66, %8, %cst_57 {dimension_numbers = #tpu.dot_dimension_numbers<[1], [0], [0], [1], [0, 0, 1, 1], [], []>} : vector<2x32xf32>, vector<32x128xf32>, vector<2x128xf32> -> vector<2x128xf32>
    %106 = arith.addf %102, %105 : vector<2x128xf32>
    %107 = vector.extract_strided_slice %106 {offsets = [0, 0], sizes = [2, 32], strides = [1, 1]} : vector<2x128xf32> to vector<2x32xf32>
    %108 = arith.negf %107 : vector<2x32xf32>
    %109 = math.exp %108 : vector<2x32xf32>
    %cst_58 = arith.constant 1.000000e+00 : f32
    %110 = vector.broadcast %cst_58 : f32 to vector<2x32xf32>
    %111 = arith.addf %110, %109 : vector<2x32xf32>
    %112 = arith.divf %110, %111 : vector<2x32xf32>
    %113 = vector.extract_strided_slice %106 {offsets = [0, 32], sizes = [2, 32], strides = [1, 1]} : vector<2x128xf32> to vector<2x32xf32>
    %114 = arith.negf %113 : vector<2x32xf32>
    %115 = math.exp %114 : vector<2x32xf32>
    %cst_59 = arith.constant 1.000000e+00 : f32
    %116 = vector.broadcast %cst_59 : f32 to vector<2x32xf32>
    %117 = arith.addf %116, %115 : vector<2x32xf32>
    %118 = arith.divf %116, %117 : vector<2x32xf32>
    %119 = vector.extract_strided_slice %106 {offsets = [0, 64], sizes = [2, 32], strides = [1, 1]} : vector<2x128xf32> to vector<2x32xf32>
    %120 = math.tanh %119 : vector<2x32xf32>
    %121 = vector.extract_strided_slice %106 {offsets = [0, 96], sizes = [2, 32], strides = [1, 1]} : vector<2x128xf32> to vector<2x32xf32>
    %122 = arith.negf %121 : vector<2x32xf32>
    %123 = math.exp %122 : vector<2x32xf32>
    %cst_60 = arith.constant 1.000000e+00 : f32
    %124 = vector.broadcast %cst_60 : f32 to vector<2x32xf32>
    %125 = arith.addf %124, %123 : vector<2x32xf32>
    %126 = arith.divf %124, %125 : vector<2x32xf32>
    %127 = arith.mulf %118, %64 : vector<2x32xf32>
    %128 = arith.mulf %112, %120 : vector<2x32xf32>
    %129 = arith.addf %127, %128 : vector<2x32xf32>
    %130 = math.tanh %129 : vector<2x32xf32>
    %131 = arith.mulf %126, %130 : vector<2x32xf32>
    %cst_61 = arith.constant dense<0.000000e+00> : vector<2x128xf32>
    %132 = tpu.matmul %93, %10, %cst_61 {dimension_numbers = #tpu.dot_dimension_numbers<[1], [0], [0], [1], [0, 0, 1, 1], [], []>} : vector<2x32xf32>, vector<32x128xf32>, vector<2x128xf32> -> vector<2x128xf32>
    %133 = arith.addf %104, %132 : vector<2x128xf32>
    %134 = vector.extract_strided_slice %133 {offsets = [0, 0], sizes = [2, 32], strides = [1, 1]} : vector<2x128xf32> to vector<2x32xf32>
    %135 = arith.negf %134 : vector<2x32xf32>
    %136 = math.exp %135 : vector<2x32xf32>
    %cst_62 = arith.constant 1.000000e+00 : f32
    %137 = vector.broadcast %cst_62 : f32 to vector<2x32xf32>
    %138 = arith.addf %137, %136 : vector<2x32xf32>
    %139 = arith.divf %137, %138 : vector<2x32xf32>
    %140 = vector.extract_strided_slice %133 {offsets = [0, 32], sizes = [2, 32], strides = [1, 1]} : vector<2x128xf32> to vector<2x32xf32>
    %141 = arith.negf %140 : vector<2x32xf32>
    %142 = math.exp %141 : vector<2x32xf32>
    %cst_63 = arith.constant 1.000000e+00 : f32
    %143 = vector.broadcast %cst_63 : f32 to vector<2x32xf32>
    %144 = arith.addf %143, %142 : vector<2x32xf32>
    %145 = arith.divf %143, %144 : vector<2x32xf32>
    %146 = vector.extract_strided_slice %133 {offsets = [0, 64], sizes = [2, 32], strides = [1, 1]} : vector<2x128xf32> to vector<2x32xf32>
    %147 = math.tanh %146 : vector<2x32xf32>
    %148 = vector.extract_strided_slice %133 {offsets = [0, 96], sizes = [2, 32], strides = [1, 1]} : vector<2x128xf32> to vector<2x32xf32>
    %149 = arith.negf %148 : vector<2x32xf32>
    %150 = math.exp %149 : vector<2x32xf32>
    %cst_64 = arith.constant 1.000000e+00 : f32
    %151 = vector.broadcast %cst_64 : f32 to vector<2x32xf32>
    %152 = arith.addf %151, %150 : vector<2x32xf32>
    %153 = arith.divf %151, %152 : vector<2x32xf32>
    %154 = arith.mulf %145, %91 : vector<2x32xf32>
    %155 = arith.mulf %139, %147 : vector<2x32xf32>
    %156 = arith.addf %154, %155 : vector<2x32xf32>
    %157 = math.tanh %156 : vector<2x32xf32>
    %158 = arith.mulf %153, %157 : vector<2x32xf32>
    %159 = arith.index_cast %98 : i32 to index
    %c0_65 = arith.constant 0 : index
    %160 = vector.load %arg6[%159, %c0_65] : memref<8x32xf32, #tpu.memory_space<vmem>>, vector<2x32xf32>
    tpu.vector_store %arg6[%159, %c0_65], %131 {strides = array<i32>} : memref<8x32xf32, #tpu.memory_space<vmem>>, vector<2x32xf32>,
    %161 = arith.index_cast %100 : i32 to index
    %c0_66 = arith.constant 0 : index
    %162 = vector.load %arg7[%161, %c0_66] : memref<8x32xf32, #tpu.memory_space<vmem>>, vector<2x32xf32>
    tpu.vector_store %arg7[%161, %c0_66], %158 {strides = array<i32>} : memref<8x32xf32, #tpu.memory_space<vmem>>, vector<2x32xf32>,
    %c2_i32_67 = arith.constant 2 : i32
    %c2_i32_68 = arith.constant 2 : i32
    %163 = arith.muli %c2_i32_67, %c2_i32_68 : i32
    %c3_i32_69 = arith.constant 3 : i32
    %164 = arith.subi %c3_i32_69, %c2_i32_67 : i32
    %c2_i32_70 = arith.constant 2 : i32
    %165 = arith.muli %164, %c2_i32_70 : i32
    %166 = arith.index_cast %163 : i32 to index
    %c0_71 = arith.constant 0 : index
    %167 = vector.load %arg10[%166, %c0_71] : memref<8x128xf32, #tpu.memory_space<vmem>>, vector<2x128xf32>
    %168 = arith.index_cast %165 : i32 to index
    %c0_72 = arith.constant 0 : index
    %169 = vector.load %arg11[%168, %c0_72] : memref<8x128xf32, #tpu.memory_space<vmem>>, vector<2x128xf32>
    %cst_73 = arith.constant dense<0.000000e+00> : vector<2x128xf32>
    %170 = tpu.matmul %131, %8, %cst_73 {dimension_numbers = #tpu.dot_dimension_numbers<[1], [0], [0], [1], [0, 0, 1, 1], [], []>} : vector<2x32xf32>, vector<32x128xf32>, vector<2x128xf32> -> vector<2x128xf32>
    %171 = arith.addf %167, %170 : vector<2x128xf32>
    %172 = vector.extract_strided_slice %171 {offsets = [0, 0], sizes = [2, 32], strides = [1, 1]} : vector<2x128xf32> to vector<2x32xf32>
    %173 = arith.negf %172 : vector<2x32xf32>
    %174 = math.exp %173 : vector<2x32xf32>
    %cst_74 = arith.constant 1.000000e+00 : f32
    %175 = vector.broadcast %cst_74 : f32 to vector<2x32xf32>
    %176 = arith.addf %175, %174 : vector<2x32xf32>
    %177 = arith.divf %175, %176 : vector<2x32xf32>
    %178 = vector.extract_strided_slice %171 {offsets = [0, 32], sizes = [2, 32], strides = [1, 1]} : vector<2x128xf32> to vector<2x32xf32>
    %179 = arith.negf %178 : vector<2x32xf32>
    %180 = math.exp %179 : vector<2x32xf32>
    %cst_75 = arith.constant 1.000000e+00 : f32
    %181 = vector.broadcast %cst_75 : f32 to vector<2x32xf32>
    %182 = arith.addf %181, %180 : vector<2x32xf32>
    %183 = arith.divf %181, %182 : vector<2x32xf32>
    %184 = vector.extract_strided_slice %171 {offsets = [0, 64], sizes = [2, 32], strides = [1, 1]} : vector<2x128xf32> to vector<2x32xf32>
    %185 = math.tanh %184 : vector<2x32xf32>
    %186 = vector.extract_strided_slice %171 {offsets = [0, 96], sizes = [2, 32], strides = [1, 1]} : vector<2x128xf32> to vector<2x32xf32>
    %187 = arith.negf %186 : vector<2x32xf32>
    %188 = math.exp %187 : vector<2x32xf32>
    %cst_76 = arith.constant 1.000000e+00 : f32
    %189 = vector.broadcast %cst_76 : f32 to vector<2x32xf32>
    %190 = arith.addf %189, %188 : vector<2x32xf32>
    %191 = arith.divf %189, %190 : vector<2x32xf32>
    %192 = arith.mulf %183, %129 : vector<2x32xf32>
    %193 = arith.mulf %177, %185 : vector<2x32xf32>
    %194 = arith.addf %192, %193 : vector<2x32xf32>
    %195 = math.tanh %194 : vector<2x32xf32>
    %196 = arith.mulf %191, %195 : vector<2x32xf32>
    %cst_77 = arith.constant dense<0.000000e+00> : vector<2x128xf32>
    %197 = tpu.matmul %158, %10, %cst_77 {dimension_numbers = #tpu.dot_dimension_numbers<[1], [0], [0], [1], [0, 0, 1, 1], [], []>} : vector<2x32xf32>, vector<32x128xf32>, vector<2x128xf32> -> vector<2x128xf32>
    %198 = arith.addf %169, %197 : vector<2x128xf32>
    %199 = vector.extract_strided_slice %198 {offsets = [0, 0], sizes = [2, 32], strides = [1, 1]} : vector<2x128xf32> to vector<2x32xf32>
    %200 = arith.negf %199 : vector<2x32xf32>
    %201 = math.exp %200 : vector<2x32xf32>
    %cst_78 = arith.constant 1.000000e+00 : f32
    %202 = vector.broadcast %cst_78 : f32 to vector<2x32xf32>
    %203 = arith.addf %202, %201 : vector<2x32xf32>
    %204 = arith.divf %202, %203 : vector<2x32xf32>
    %205 = vector.extract_strided_slice %198 {offsets = [0, 32], sizes = [2, 32], strides = [1, 1]} : vector<2x128xf32> to vector<2x32xf32>
    %206 = arith.negf %205 : vector<2x32xf32>
    %207 = math.exp %206 : vector<2x32xf32>
    %cst_79 = arith.constant 1.000000e+00 : f32
    %208 = vector.broadcast %cst_79 : f32 to vector<2x32xf32>
    %209 = arith.addf %208, %207 : vector<2x32xf32>
    %210 = arith.divf %208, %209 : vector<2x32xf32>
    %211 = vector.extract_strided_slice %198 {offsets = [0, 64], sizes = [2, 32], strides = [1, 1]} : vector<2x128xf32> to vector<2x32xf32>
    %212 = math.tanh %211 : vector<2x32xf32>
    %213 = vector.extract_strided_slice %198 {offsets = [0, 96], sizes = [2, 32], strides = [1, 1]} : vector<2x128xf32> to vector<2x32xf32>
    %214 = arith.negf %213 : vector<2x32xf32>
    %215 = math.exp %214 : vector<2x32xf32>
    %cst_80 = arith.constant 1.000000e+00 : f32
    %216 = vector.broadcast %cst_80 : f32 to vector<2x32xf32>
    %217 = arith.addf %216, %215 : vector<2x32xf32>
    %218 = arith.divf %216, %217 : vector<2x32xf32>
    %219 = arith.mulf %210, %156 : vector<2x32xf32>
    %220 = arith.mulf %204, %212 : vector<2x32xf32>
    %221 = arith.addf %219, %220 : vector<2x32xf32>
    %222 = math.tanh %221 : vector<2x32xf32>
    %223 = arith.mulf %218, %222 : vector<2x32xf32>
    %224 = arith.index_cast %163 : i32 to index
    %c0_81 = arith.constant 0 : index
    %225 = vector.load %arg6[%224, %c0_81] : memref<8x32xf32, #tpu.memory_space<vmem>>, vector<2x32xf32>
    tpu.vector_store %arg6[%224, %c0_81], %196 {strides = array<i32>} : memref<8x32xf32, #tpu.memory_space<vmem>>, vector<2x32xf32>,
    %226 = arith.index_cast %165 : i32 to index
    %c0_82 = arith.constant 0 : index
    %227 = vector.load %arg7[%226, %c0_82] : memref<8x32xf32, #tpu.memory_space<vmem>>, vector<2x32xf32>
    tpu.vector_store %arg7[%226, %c0_82], %223 {strides = array<i32>} : memref<8x32xf32, #tpu.memory_space<vmem>>, vector<2x32xf32>,
    %c3_i32_83 = arith.constant 3 : i32
    %c2_i32_84 = arith.constant 2 : i32
    %228 = arith.muli %c3_i32_83, %c2_i32_84 : i32
    %c3_i32_85 = arith.constant 3 : i32
    %229 = arith.subi %c3_i32_85, %c3_i32_83 : i32
    %c2_i32_86 = arith.constant 2 : i32
    %230 = arith.muli %229, %c2_i32_86 : i32
    %231 = arith.index_cast %228 : i32 to index
    %c0_87 = arith.constant 0 : index
    %232 = vector.load %arg10[%231, %c0_87] : memref<8x128xf32, #tpu.memory_space<vmem>>, vector<2x128xf32>
    %233 = arith.index_cast %230 : i32 to index
    %c0_88 = arith.constant 0 : index
    %234 = vector.load %arg11[%233, %c0_88] : memref<8x128xf32, #tpu.memory_space<vmem>>, vector<2x128xf32>
    %cst_89 = arith.constant dense<0.000000e+00> : vector<2x128xf32>
    %235 = tpu.matmul %196, %8, %cst_89 {dimension_numbers = #tpu.dot_dimension_numbers<[1], [0], [0], [1], [0, 0, 1, 1], [], []>} : vector<2x32xf32>, vector<32x128xf32>, vector<2x128xf32> -> vector<2x128xf32>
    %236 = arith.addf %232, %235 : vector<2x128xf32>
    %237 = vector.extract_strided_slice %236 {offsets = [0, 0], sizes = [2, 32], strides = [1, 1]} : vector<2x128xf32> to vector<2x32xf32>
    %238 = arith.negf %237 : vector<2x32xf32>
    %239 = math.exp %238 : vector<2x32xf32>
    %cst_90 = arith.constant 1.000000e+00 : f32
    %240 = vector.broadcast %cst_90 : f32 to vector<2x32xf32>
    %241 = arith.addf %240, %239 : vector<2x32xf32>
    %242 = arith.divf %240, %241 : vector<2x32xf32>
    %243 = vector.extract_strided_slice %236 {offsets = [0, 32], sizes = [2, 32], strides = [1, 1]} : vector<2x128xf32> to vector<2x32xf32>
    %244 = arith.negf %243 : vector<2x32xf32>
    %245 = math.exp %244 : vector<2x32xf32>
    %cst_91 = arith.constant 1.000000e+00 : f32
    %246 = vector.broadcast %cst_91 : f32 to vector<2x32xf32>
    %247 = arith.addf %246, %245 : vector<2x32xf32>
    %248 = arith.divf %246, %247 : vector<2x32xf32>
    %249 = vector.extract_strided_slice %236 {offsets = [0, 64], sizes = [2, 32], strides = [1, 1]} : vector<2x128xf32> to vector<2x32xf32>
    %250 = math.tanh %249 : vector<2x32xf32>
    %251 = vector.extract_strided_slice %236 {offsets = [0, 96], sizes = [2, 32], strides = [1, 1]} : vector<2x128xf32> to vector<2x32xf32>
    %252 = arith.negf %251 : vector<2x32xf32>
    %253 = math.exp %252 : vector<2x32xf32>
    %cst_92 = arith.constant 1.000000e+00 : f32
    %254 = vector.broadcast %cst_92 : f32 to vector<2x32xf32>
    %255 = arith.addf %254, %253 : vector<2x32xf32>
    %256 = arith.divf %254, %255 : vector<2x32xf32>
    %257 = arith.mulf %248, %194 : vector<2x32xf32>
    %258 = arith.mulf %242, %250 : vector<2x32xf32>
    %259 = arith.addf %257, %258 : vector<2x32xf32>
    %260 = math.tanh %259 : vector<2x32xf32>
    %261 = arith.mulf %256, %260 : vector<2x32xf32>
    %cst_93 = arith.constant dense<0.000000e+00> : vector<2x128xf32>
    %262 = tpu.matmul %223, %10, %cst_93 {dimension_numbers = #tpu.dot_dimension_numbers<[1], [0], [0], [1], [0, 0, 1, 1], [], []>} : vector<2x32xf32>, vector<32x128xf32>, vector<2x128xf32> -> vector<2x128xf32>
    %263 = arith.addf %234, %262 : vector<2x128xf32>
    %264 = vector.extract_strided_slice %263 {offsets = [0, 0], sizes = [2, 32], strides = [1, 1]} : vector<2x128xf32> to vector<2x32xf32>
    %265 = arith.negf %264 : vector<2x32xf32>
    %266 = math.exp %265 : vector<2x32xf32>
    %cst_94 = arith.constant 1.000000e+00 : f32
    %267 = vector.broadcast %cst_94 : f32 to vector<2x32xf32>
    %268 = arith.addf %267, %266 : vector<2x32xf32>
    %269 = arith.divf %267, %268 : vector<2x32xf32>
    %270 = vector.extract_strided_slice %263 {offsets = [0, 32], sizes = [2, 32], strides = [1, 1]} : vector<2x128xf32> to vector<2x32xf32>
    %271 = arith.negf %270 : vector<2x32xf32>
    %272 = math.exp %271 : vector<2x32xf32>
    %cst_95 = arith.constant 1.000000e+00 : f32
    %273 = vector.broadcast %cst_95 : f32 to vector<2x32xf32>
    %274 = arith.addf %273, %272 : vector<2x32xf32>
    %275 = arith.divf %273, %274 : vector<2x32xf32>
    %276 = vector.extract_strided_slice %263 {offsets = [0, 64], sizes = [2, 32], strides = [1, 1]} : vector<2x128xf32> to vector<2x32xf32>
    %277 = math.tanh %276 : vector<2x32xf32>
    %278 = vector.extract_strided_slice %263 {offsets = [0, 96], sizes = [2, 32], strides = [1, 1]} : vector<2x128xf32> to vector<2x32xf32>
    %279 = arith.negf %278 : vector<2x32xf32>
    %280 = math.exp %279 : vector<2x32xf32>
    %cst_96 = arith.constant 1.000000e+00 : f32
    %281 = vector.broadcast %cst_96 : f32 to vector<2x32xf32>
    %282 = arith.addf %281, %280 : vector<2x32xf32>
    %283 = arith.divf %281, %282 : vector<2x32xf32>
    %284 = arith.mulf %275, %221 : vector<2x32xf32>
    %285 = arith.mulf %269, %277 : vector<2x32xf32>
    %286 = arith.addf %284, %285 : vector<2x32xf32>
    %287 = math.tanh %286 : vector<2x32xf32>
    %288 = arith.mulf %283, %287 : vector<2x32xf32>
    %289 = arith.index_cast %228 : i32 to index
    %c0_97 = arith.constant 0 : index
    %290 = vector.load %arg6[%289, %c0_97] : memref<8x32xf32, #tpu.memory_space<vmem>>, vector<2x32xf32>
    tpu.vector_store %arg6[%289, %c0_97], %261 {strides = array<i32>} : memref<8x32xf32, #tpu.memory_space<vmem>>, vector<2x32xf32>,
    %291 = arith.index_cast %230 : i32 to index
    %c0_98 = arith.constant 0 : index
    %292 = vector.load %arg7[%291, %c0_98] : memref<8x32xf32, #tpu.memory_space<vmem>>, vector<2x32xf32>
    tpu.vector_store %arg7[%291, %c0_98], %288 {strides = array<i32>} : memref<8x32xf32, #tpu.memory_space<vmem>>, vector<2x32xf32>,
    %c4_i32 = arith.constant 4 : i32
    %c0_99 = arith.constant 0 : index
    %c0_100 = arith.constant 0 : index
    %c0_101 = arith.constant 0 : index
    %293 = vector.load %arg8[%c0_99, %c0_100, %c0_101] : memref<2x2x32xf32, #tpu.memory_space<vmem>>, vector<1x2x32xf32>
    %294 = vector.shape_cast %293 : vector<1x2x32xf32> to vector<2x32xf32>
    %295 = vector.shape_cast %261 : vector<2x32xf32> to vector<1x2x32xf32>
    tpu.vector_store %arg8[%c0_99, %c0_100, %c0_101], %295 {strides = array<i32>} : memref<2x2x32xf32, #tpu.memory_space<vmem>>, vector<1x2x32xf32>,
    %c0_102 = arith.constant 0 : index
    %c0_103 = arith.constant 0 : index
    %c0_104 = arith.constant 0 : index
    %296 = vector.load %arg9[%c0_102, %c0_103, %c0_104] : memref<2x2x32xf32, #tpu.memory_space<vmem>>, vector<1x2x32xf32>
    %297 = vector.shape_cast %296 : vector<1x2x32xf32> to vector<2x32xf32>
    %298 = vector.shape_cast %259 : vector<2x32xf32> to vector<1x2x32xf32>
    tpu.vector_store %arg9[%c0_102, %c0_103, %c0_104], %298 {strides = array<i32>} : memref<2x2x32xf32, #tpu.memory_space<vmem>>, vector<1x2x32xf32>,
    %c1_105 = arith.constant 1 : index
    %c0_106 = arith.constant 0 : index
    %c0_107 = arith.constant 0 : index
    %299 = vector.load %arg8[%c1_105, %c0_106, %c0_107] : memref<2x2x32xf32, #tpu.memory_space<vmem>>, vector<1x2x32xf32>
    %300 = vector.shape_cast %299 : vector<1x2x32xf32> to vector<2x32xf32>
    %301 = vector.shape_cast %288 : vector<2x32xf32> to vector<1x2x32xf32>
    tpu.vector_store %arg8[%c1_105, %c0_106, %c0_107], %301 {strides = array<i32>} : memref<2x2x32xf32, #tpu.memory_space<vmem>>, vector<1x2x32xf32>,
    %c1_108 = arith.constant 1 : index
    %c0_109 = arith.constant 0 : index
    %c0_110 = arith.constant 0 : index
    %302 = vector.load %arg9[%c1_108, %c0_109, %c0_110] : memref<2x2x32xf32, #tpu.memory_space<vmem>>, vector<1x2x32xf32>
    %303 = vector.shape_cast %302 : vector<1x2x32xf32> to vector<2x32xf32>
    %304 = vector.shape_cast %286 : vector<2x32xf32> to vector<1x2x32xf32>
    tpu.vector_store %arg9[%c1_108, %c0_109, %c0_110], %304 {strides = array<i32>} : memref<2x2x32xf32, #tpu.memory_space<vmem>>, vector<1x2x32xf32>,
    return
  }
  func.func @transform_0(%arg0: i32) -> (i32, i32) {
    %c0_i32 = arith.constant 0 : i32
    %c0_i32_0 = arith.constant 0 : i32
    return %arg0, %c0_i32 : i32, i32
  }
  func.func @transform_1(%arg0: i32) -> (i32, i32) {
    %c1_i32 = arith.constant 1 : i32
    %0 = arith.subi %c1_i32, %arg0 : i32
    %c0_i32 = arith.constant 0 : i32
    %c0_i32_0 = arith.constant 0 : i32
    return %0, %c0_i32 : i32, i32
  }
  func.func @transform_2(%arg0: i32) -> (i32, i32, i32) {
    %c0_i32 = arith.constant 0 : i32
    %c0_i32_0 = arith.constant 0 : i32
    %c0_i32_1 = arith.constant 0 : i32
    %c0_i32_2 = arith.constant 0 : i32
    return %c0_i32, %c0_i32_0, %c0_i32_1 : i32, i32, i32
  }
  func.func @transform_3(%arg0: i32) -> (i32, i32, i32) {
    %c0_i32 = arith.constant 0 : i32
    %c0_i32_0 = arith.constant 0 : i32
    %c0_i32_1 = arith.constant 0 : i32
    %c0_i32_2 = arith.constant 0 : i32
    return %c0_i32, %c0_i32_0, %c0_i32_1 : i32, i32, i32
  }
  func.func @transform_4(%arg0: i32) -> (i32, i32, i32) {
    %c0_i32 = arith.constant 0 : i32
    %c0_i32_0 = arith.constant 0 : i32
    %c0_i32_1 = arith.constant 0 : i32
    %c0_i32_2 = arith.constant 0 : i32
    return %c0_i32, %c0_i32_0, %c0_i32_1 : i32, i32, i32
  }
  func.func @transform_5(%arg0: i32) -> (i32, i32) {
    %c0_i32 = arith.constant 0 : i32
    %c0_i32_0 = arith.constant 0 : i32
    return %arg0, %c0_i32 : i32, i32
  }
  func.func @transform_6(%arg0: i32) -> (i32, i32) {
    %c1_i32 = arith.constant 1 : i32
    %0 = arith.subi %c1_i32, %arg0 : i32
    %c0_i32 = arith.constant 0 : i32
    %c0_i32_0 = arith.constant 0 : i32
    return %0, %c0_i32 : i32, i32
  }
}

module attributes {stable_mosaic.version = 11 : i64} {
  func.func @_bilstm_layer_kernel(%arg0: i32, %arg1: memref<8x16xf32, #tpu.memory_space<vmem>>, %arg2: memref<8x16xf32, #tpu.memory_space<vmem>>, %arg3: memref<2x16x128xf32, #tpu.memory_space<vmem>>, %arg4: memref<2x32x128xf32, #tpu.memory_space<vmem>>, %arg5: memref<2x1x128xf32, #tpu.memory_space<vmem>>, %arg6: memref<8x32xf32, #tpu.memory_space<vmem>>, %arg7: memref<8x32xf32, #tpu.memory_space<vmem>>, %arg8: memref<2x2x32xf32, #tpu.memory_space<vmem>>, %arg9: memref<2x2x32xf32, #tpu.memory_space<vmem>>, %arg10: memref<8x128xf32, #tpu.memory_space<vmem>>, %arg11: memref<8x128xf32, #tpu.memory_space<vmem>>) attributes {dimension_semantics = [#tpu.dimension_semantics<arbitrary>], iteration_bounds = array<i64: 2>, scalar_prefetch = 0 : i64, scratch_operands = 4 : i64, tpu.core_type = #tpu.core_type<tc>, window_params = [{transform_indices = @transform_0, window_bounds = array<i64: 8, 16>}, {transform_indices = @transform_1, window_bounds = array<i64: 8, 16>}, {pipeline_mode = #tpu.pipeline_mode<synchronous>, transform_indices = @transform_2, window_bounds = array<i64: 2, 16, 128>}, {pipeline_mode = #tpu.pipeline_mode<synchronous>, transform_indices = @transform_3, window_bounds = array<i64: 2, 32, 128>}, {pipeline_mode = #tpu.pipeline_mode<synchronous>, transform_indices = @transform_4, window_bounds = array<i64: 2, 1, 128>}, {transform_indices = @transform_5, window_bounds = array<i64: 8, 32>}, {transform_indices = @transform_6, window_bounds = array<i64: 8, 32>}]} {
    %c0_i32 = arith.constant 0 : i32
    %0 = arith.cmpi eq, %arg0, %c0_i32 : i32
    %1 = arith.extui %0 : i1 to i32
    %c0_i32_0 = arith.constant 0 : i32
    %2 = arith.cmpi ne, %1, %c0_i32_0 : i32
    scf.if %2 {
      %cst_111 = arith.constant 0.000000e+00 : f32
      %305 = vector.broadcast %cst_111 : f32 to vector<2x2x32xf32>
      %c0_112 = arith.constant 0 : index
      %c0_113 = arith.constant 0 : index
      %c0_114 = arith.constant 0 : index
      %306 = vector.load %arg8[%c0_112, %c0_113, %c0_114] : memref<2x2x32xf32, #tpu.memory_space<vmem>>, vector<2x2x32xf32>
      tpu.vector_store %arg8[%c0_112, %c0_113, %c0_114], %305 {strides = array<i32>} : memref<2x2x32xf32, #tpu.memory_space<vmem>>, vector<2x2x32xf32>,
      %cst_115 = arith.constant 0.000000e+00 : f32
      %307 = vector.broadcast %cst_115 : f32 to vector<2x2x32xf32>
      %c0_116 = arith.constant 0 : index
      %c0_117 = arith.constant 0 : index
      %c0_118 = arith.constant 0 : index
      %308 = vector.load %arg9[%c0_116, %c0_117, %c0_118] : memref<2x2x32xf32, #tpu.memory_space<vmem>>, vector<2x2x32xf32>
      tpu.vector_store %arg9[%c0_116, %c0_117, %c0_118], %307 {strides = array<i32>} : memref<2x2x32xf32, #tpu.memory_space<vmem>>, vector<2x2x32xf32>,
    } else {
    }
    %c0 = arith.constant 0 : index
    %c0_1 = arith.constant 0 : index
    %c0_2 = arith.constant 0 : index
    %3 = vector.load %arg3[%c0, %c0_1, %c0_2] : memref<2x16x128xf32, #tpu.memory_space<vmem>>, vector<1x16x128xf32>
    %4 = vector.shape_cast %3 : vector<1x16x128xf32> to vector<16x128xf32>
    %c1 = arith.constant 1 : index
    %c0_3 = arith.constant 0 : index
    %c0_4 = arith.constant 0 : index
    %5 = vector.load %arg3[%c1, %c0_3, %c0_4] : memref<2x16x128xf32, #tpu.memory_space<vmem>>, vector<1x16x128xf32>
    %6 = vector.shape_cast %5 : vector<1x16x128xf32> to vector<16x128xf32>
    %c0_5 = arith.constant 0 : index
    %c0_6 = arith.constant 0 : index
    %c0_7 = arith.constant 0 : index
    %7 = vector.load %arg4[%c0_5, %c0_6, %c0_7] : memref<2x32x128xf32, #tpu.memory_space<vmem>>, vector<1x32x128xf32>
    %8 = vector.shape_cast %7 : vector<1x32x128xf32> to vector<32x128xf32>
    %c1_8 = arith.constant 1 : index
    %c0_9 = arith.constant 0 : index
    %c0_10 = arith.constant 0 : index
    %9 = vector.load %arg4[%c1_8, %c0_9, %c0_10] : memref<2x32x128xf32, #tpu.memory_space<vmem>>, vector<1x32x128xf32>
    %10 = vector.shape_cast %9 : vector<1x32x128xf32> to vector<32x128xf32>
    %c0_11 = arith.constant 0 : index
    %c0_12 = arith.constant 0 : index
    %c0_13 = arith.constant 0 : index
    %11 = vector.load %arg5[%c0_11, %c0_12, %c0_13] : memref<2x1x128xf32, #tpu.memory_space<vmem>>, vector<1x1x128xf32>
    %12 = vector.shape_cast %11 : vector<1x1x128xf32> to vector<1x128xf32>
    %c1_14 = arith.constant 1 : index
    %c0_15 = arith.constant 0 : index
    %c0_16 = arith.constant 0 : index
    %13 = vector.load %arg5[%c1_14, %c0_15, %c0_16] : memref<2x1x128xf32, #tpu.memory_space<vmem>>, vector<1x1x128xf32>
    %14 = vector.shape_cast %13 : vector<1x1x128xf32> to vector<1x128xf32>
    %c0_17 = arith.constant 0 : index
    %c0_18 = arith.constant 0 : index
    %15 = vector.load %arg1[%c0_17, %c0_18] : memref<8x16xf32, #tpu.memory_space<vmem>>, vector<8x16xf32>
    %cst = arith.constant dense<0.000000e+00> : vector<8x128xf32>
    %16 = tpu.matmul %15, %4, %cst {dimension_numbers = #tpu.dot_dimension_numbers<[1], [0], [0], [1], [0, 0, 1, 1], [], []>} : vector<8x16xf32>, vector<16x128xf32>, vector<8x128xf32> -> vector<8x128xf32>
    %17 = vector.broadcast %12 : vector<1x128xf32> to vector<8x128xf32>
    %18 = arith.addf %16, %17 : vector<8x128xf32>
    %c0_19 = arith.constant 0 : index
    %c0_20 = arith.constant 0 : index
    %19 = vector.load %arg10[%c0_19, %c0_20] : memref<8x128xf32, #tpu.memory_space<vmem>>, vector<8x128xf32>
    tpu.vector_store %arg10[%c0_19, %c0_20], %18 {strides = array<i32>} : memref<8x128xf32, #tpu.memory_space<vmem>>, vector<8x128xf32>,
    %c0_21 = arith.constant 0 : index
    %c0_22 = arith.constant 0 : index
    %20 = vector.load %arg2[%c0_21, %c0_22] : memref<8x16xf32, #tpu.memory_space<vmem>>, vector<8x16xf32>
    %cst_23 = arith.constant dense<0.000000e+00> : vector<8x128xf32>
    %21 = tpu.matmul %20, %6, %cst_23 {dimension_numbers = #tpu.dot_dimension_numbers<[1], [0], [0], [1], [0, 0, 1, 1], [], []>} : vector<8x16xf32>, vector<16x128xf32>, vector<8x128xf32> -> vector<8x128xf32>
    %22 = vector.broadcast %14 : vector<1x128xf32> to vector<8x128xf32>
    %23 = arith.addf %21, %22 : vector<8x128xf32>
    %c0_24 = arith.constant 0 : index
    %c0_25 = arith.constant 0 : index
    %24 = vector.load %arg11[%c0_24, %c0_25] : memref<8x128xf32, #tpu.memory_space<vmem>>, vector<8x128xf32>
    tpu.vector_store %arg11[%c0_24, %c0_25], %23 {strides = array<i32>} : memref<8x128xf32, #tpu.memory_space<vmem>>, vector<8x128xf32>,
    %c0_26 = arith.constant 0 : index
    %c0_27 = arith.constant 0 : index
    %c0_28 = arith.constant 0 : index
    %25 = vector.load %arg8[%c0_26, %c0_27, %c0_28] : memref<2x2x32xf32, #tpu.memory_space<vmem>>, vector<1x2x32xf32>
    %26 = vector.shape_cast %25 : vector<1x2x32xf32> to vector<2x32xf32>
    %c0_29 = arith.constant 0 : index
    %c0_30 = arith.constant 0 : index
    %c0_31 = arith.constant 0 : index
    %27 = vector.load %arg9[%c0_29, %c0_30, %c0_31] : memref<2x2x32xf32, #tpu.memory_space<vmem>>, vector<1x2x32xf32>
    %28 = vector.shape_cast %27 : vector<1x2x32xf32> to vector<2x32xf32>
    %c1_32 = arith.constant 1 : index
    %c0_33 = arith.constant 0 : index
    %c0_34 = arith.constant 0 : index
    %29 = vector.load %arg8[%c1_32, %c0_33, %c0_34] : memref<2x2x32xf32, #tpu.memory_space<vmem>>, vector<1x2x32xf32>
    %30 = vector.shape_cast %29 : vector<1x2x32xf32> to vector<2x32xf32>
    %c1_35 = arith.constant 1 : index
    %c0_36 = arith.constant 0 : index
    %c0_37 = arith.constant 0 : index
    %31 = vector.load %arg9[%c1_35, %c0_36, %c0_37] : memref<2x2x32xf32, #tpu.memory_space<vmem>>, vector<1x2x32xf32>
    %32 = vector.shape_cast %31 : vector<1x2x32xf32> to vector<2x32xf32>
    %c0_i32_38 = arith.constant 0 : i32
    %c2_i32 = arith.constant 2 : i32
    %33 = arith.muli %c0_i32_38, %c2_i32 : i32
    %c3_i32 = arith.constant 3 : i32
    %34 = arith.subi %c3_i32, %c0_i32_38 : i32
    %c2_i32_39 = arith.constant 2 : i32
    %35 = arith.muli %34, %c2_i32_39 : i32
    %36 = arith.index_cast %33 : i32 to index
    %c0_40 = arith.constant 0 : index
    %37 = vector.load %arg10[%36, %c0_40] : memref<8x128xf32, #tpu.memory_space<vmem>>, vector<2x128xf32>
    %38 = arith.index_cast %35 : i32 to index
    %c0_41 = arith.constant 0 : index
    %39 = vector.load %arg11[%38, %c0_41] : memref<8x128xf32, #tpu.memory_space<vmem>>, vector<2x128xf32>
    %cst_42 = arith.constant dense<0.000000e+00> : vector<2x128xf32>
    %40 = tpu.matmul %26, %8, %cst_42 {dimension_numbers = #tpu.dot_dimension_numbers<[1], [0], [0], [1], [0, 0, 1, 1], [], []>} : vector<2x32xf32>, vector<32x128xf32>, vector<2x128xf32> -> vector<2x128xf32>
    %41 = arith.addf %37, %40 : vector<2x128xf32>
    %42 = vector.extract_strided_slice %41 {offsets = [0, 0], sizes = [2, 32], strides = [1, 1]} : vector<2x128xf32> to vector<2x32xf32>
    %43 = arith.negf %42 : vector<2x32xf32>
    %44 = math.exp %43 : vector<2x32xf32>
    %cst_43 = arith.constant 1.000000e+00 : f32
    %45 = vector.broadcast %cst_43 : f32 to vector<2x32xf32>
    %46 = arith.addf %45, %44 : vector<2x32xf32>
    %47 = arith.divf %45, %46 : vector<2x32xf32>
    %48 = vector.extract_strided_slice %41 {offsets = [0, 32], sizes = [2, 32], strides = [1, 1]} : vector<2x128xf32> to vector<2x32xf32>
    %49 = arith.negf %48 : vector<2x32xf32>
    %50 = math.exp %49 : vector<2x32xf32>
    %cst_44 = arith.constant 1.000000e+00 : f32
    %51 = vector.broadcast %cst_44 : f32 to vector<2x32xf32>
    %52 = arith.addf %51, %50 : vector<2x32xf32>
    %53 = arith.divf %51, %52 : vector<2x32xf32>
    %54 = vector.extract_strided_slice %41 {offsets = [0, 64], sizes = [2, 32], strides = [1, 1]} : vector<2x128xf32> to vector<2x32xf32>
    %55 = math.tanh %54 : vector<2x32xf32>
    %56 = vector.extract_strided_slice %41 {offsets = [0, 96], sizes = [2, 32], strides = [1, 1]} : vector<2x128xf32> to vector<2x32xf32>
    %57 = arith.negf %56 : vector<2x32xf32>
    %58 = math.exp %57 : vector<2x32xf32>
    %cst_45 = arith.constant 1.000000e+00 : f32
    %59 = vector.broadcast %cst_45 : f32 to vector<2x32xf32>
    %60 = arith.addf %59, %58 : vector<2x32xf32>
    %61 = arith.divf %59, %60 : vector<2x32xf32>
    %62 = arith.mulf %53, %28 : vector<2x32xf32>
    %63 = arith.mulf %47, %55 : vector<2x32xf32>
    %64 = arith.addf %62, %63 : vector<2x32xf32>
    %65 = math.tanh %64 : vector<2x32xf32>
    %66 = arith.mulf %61, %65 : vector<2x32xf32>
    %cst_46 = arith.constant dense<0.000000e+00> : vector<2x128xf32>
    %67 = tpu.matmul %30, %10, %cst_46 {dimension_numbers = #tpu.dot_dimension_numbers<[1], [0], [0], [1], [0, 0, 1, 1], [], []>} : vector<2x32xf32>, vector<32x128xf32>, vector<2x128xf32> -> vector<2x128xf32>
    %68 = arith.addf %39, %67 : vector<2x128xf32>
    %69 = vector.extract_strided_slice %68 {offsets = [0, 0], sizes = [2, 32], strides = [1, 1]} : vector<2x128xf32> to vector<2x32xf32>
    %70 = arith.negf %69 : vector<2x32xf32>
    %71 = math.exp %70 : vector<2x32xf32>
    %cst_47 = arith.constant 1.000000e+00 : f32
    %72 = vector.broadcast %cst_47 : f32 to vector<2x32xf32>
    %73 = arith.addf %72, %71 : vector<2x32xf32>
    %74 = arith.divf %72, %73 : vector<2x32xf32>
    %75 = vector.extract_strided_slice %68 {offsets = [0, 32], sizes = [2, 32], strides = [1, 1]} : vector<2x128xf32> to vector<2x32xf32>
    %76 = arith.negf %75 : vector<2x32xf32>
    %77 = math.exp %76 : vector<2x32xf32>
    %cst_48 = arith.constant 1.000000e+00 : f32
    %78 = vector.broadcast %cst_48 : f32 to vector<2x32xf32>
    %79 = arith.addf %78, %77 : vector<2x32xf32>
    %80 = arith.divf %78, %79 : vector<2x32xf32>
    %81 = vector.extract_strided_slice %68 {offsets = [0, 64], sizes = [2, 32], strides = [1, 1]} : vector<2x128xf32> to vector<2x32xf32>
    %82 = math.tanh %81 : vector<2x32xf32>
    %83 = vector.extract_strided_slice %68 {offsets = [0, 96], sizes = [2, 32], strides = [1, 1]} : vector<2x128xf32> to vector<2x32xf32>
    %84 = arith.negf %83 : vector<2x32xf32>
    %85 = math.exp %84 : vector<2x32xf32>
    %cst_49 = arith.constant 1.000000e+00 : f32
    %86 = vector.broadcast %cst_49 : f32 to vector<2x32xf32>
    %87 = arith.addf %86, %85 : vector<2x32xf32>
    %88 = arith.divf %86, %87 : vector<2x32xf32>
    %89 = arith.mulf %80, %32 : vector<2x32xf32>
    %90 = arith.mulf %74, %82 : vector<2x32xf32>
    %91 = arith.addf %89, %90 : vector<2x32xf32>
    %92 = math.tanh %91 : vector<2x32xf32>
    %93 = arith.mulf %88, %92 : vector<2x32xf32>
    %94 = arith.index_cast %33 : i32 to index
    %c0_50 = arith.constant 0 : index
    %95 = vector.load %arg6[%94, %c0_50] : memref<8x32xf32, #tpu.memory_space<vmem>>, vector<2x32xf32>
    tpu.vector_store %arg6[%94, %c0_50], %66 {strides = array<i32>} : memref<8x32xf32, #tpu.memory_space<vmem>>, vector<2x32xf32>,
    %96 = arith.index_cast %35 : i32 to index
    %c0_51 = arith.constant 0 : index
    %97 = vector.load %arg7[%96, %c0_51] : memref<8x32xf32, #tpu.memory_space<vmem>>, vector<2x32xf32>
    tpu.vector_store %arg7[%96, %c0_51], %93 {strides = array<i32>} : memref<8x32xf32, #tpu.memory_space<vmem>>, vector<2x32xf32>,
    %c1_i32 = arith.constant 1 : i32
    %c2_i32_52 = arith.constant 2 : i32
    %98 = arith.muli %c1_i32, %c2_i32_52 : i32
    %c3_i32_53 = arith.constant 3 : i32
    %99 = arith.subi %c3_i32_53, %c1_i32 : i32
    %c2_i32_54 = arith.constant 2 : i32
    %100 = arith.muli %99, %c2_i32_54 : i32
    %101 = arith.index_cast %98 : i32 to index
    %c0_55 = arith.constant 0 : index
    %102 = vector.load %arg10[%101, %c0_55] : memref<8x128xf32, #tpu.memory_space<vmem>>, vector<2x128xf32>
    %103 = arith.index_cast %100 : i32 to index
    %c0_56 = arith.constant 0 : index
    %104 = vector.load %arg11[%103, %c0_56] : memref<8x128xf32, #tpu.memory_space<vmem>>, vector<2x128xf32>
    %cst_57 = arith.constant dense<0.000000e+00> : vector<2x128xf32>
    %105 = tpu.matmul %66, %8, %cst_57 {dimension_numbers = #tpu.dot_dimension_numbers<[1], [0], [0], [1], [0, 0, 1, 1], [], []>} : vector<2x32xf32>, vector<32x128xf32>, vector<2x128xf32> -> vector<2x128xf32>
    %106 = arith.addf %102, %105 : vector<2x128xf32>
    %107 = vector.extract_strided_slice %106 {offsets = [0, 0], sizes = [2, 32], strides = [1, 1]} : vector<2x128xf32> to vector<2x32xf32>
    %108 = arith.negf %107 : vector<2x32xf32>
    %109 = math.exp %108 : vector<2x32xf32>
    %cst_58 = arith.constant 1.000000e+00 : f32
    %110 = vector.broadcast %cst_58 : f32 to vector<2x32xf32>
    %111 = arith.addf %110, %109 : vector<2x32xf32>
    %112 = arith.divf %110, %111 : vector<2x32xf32>
    %113 = vector.extract_strided_slice %106 {offsets = [0, 32], sizes = [2, 32], strides = [1, 1]} : vector<2x128xf32> to vector<2x32xf32>
    %114 = arith.negf %113 : vector<2x32xf32>
    %115 = math.exp %114 : vector<2x32xf32>
    %cst_59 = arith.constant 1.000000e+00 : f32
    %116 = vector.broadcast %cst_59 : f32 to vector<2x32xf32>
    %117 = arith.addf %116, %115 : vector<2x32xf32>
    %118 = arith.divf %116, %117 : vector<2x32xf32>
    %119 = vector.extract_strided_slice %106 {offsets = [0, 64], sizes = [2, 32], strides = [1, 1]} : vector<2x128xf32> to vector<2x32xf32>
    %120 = math.tanh %119 : vector<2x32xf32>
    %121 = vector.extract_strided_slice %106 {offsets = [0, 96], sizes = [2, 32], strides = [1, 1]} : vector<2x128xf32> to vector<2x32xf32>
    %122 = arith.negf %121 : vector<2x32xf32>
    %123 = math.exp %122 : vector<2x32xf32>
    %cst_60 = arith.constant 1.000000e+00 : f32
    %124 = vector.broadcast %cst_60 : f32 to vector<2x32xf32>
    %125 = arith.addf %124, %123 : vector<2x32xf32>
    %126 = arith.divf %124, %125 : vector<2x32xf32>
    %127 = arith.mulf %118, %64 : vector<2x32xf32>
    %128 = arith.mulf %112, %120 : vector<2x32xf32>
    %129 = arith.addf %127, %128 : vector<2x32xf32>
    %130 = math.tanh %129 : vector<2x32xf32>
    %131 = arith.mulf %126, %130 : vector<2x32xf32>
    %cst_61 = arith.constant dense<0.000000e+00> : vector<2x128xf32>
    %132 = tpu.matmul %93, %10, %cst_61 {dimension_numbers = #tpu.dot_dimension_numbers<[1], [0], [0], [1], [0, 0, 1, 1], [], []>} : vector<2x32xf32>, vector<32x128xf32>, vector<2x128xf32> -> vector<2x128xf32>
    %133 = arith.addf %104, %132 : vector<2x128xf32>
    %134 = vector.extract_strided_slice %133 {offsets = [0, 0], sizes = [2, 32], strides = [1, 1]} : vector<2x128xf32> to vector<2x32xf32>
    %135 = arith.negf %134 : vector<2x32xf32>
    %136 = math.exp %135 : vector<2x32xf32>
    %cst_62 = arith.constant 1.000000e+00 : f32
    %137 = vector.broadcast %cst_62 : f32 to vector<2x32xf32>
    %138 = arith.addf %137, %136 : vector<2x32xf32>
    %139 = arith.divf %137, %138 : vector<2x32xf32>
    %140 = vector.extract_strided_slice %133 {offsets = [0, 32], sizes = [2, 32], strides = [1, 1]} : vector<2x128xf32> to vector<2x32xf32>
    %141 = arith.negf %140 : vector<2x32xf32>
    %142 = math.exp %141 : vector<2x32xf32>
    %cst_63 = arith.constant 1.000000e+00 : f32
    %143 = vector.broadcast %cst_63 : f32 to vector<2x32xf32>
    %144 = arith.addf %143, %142 : vector<2x32xf32>
    %145 = arith.divf %143, %144 : vector<2x32xf32>
    %146 = vector.extract_strided_slice %133 {offsets = [0, 64], sizes = [2, 32], strides = [1, 1]} : vector<2x128xf32> to vector<2x32xf32>
    %147 = math.tanh %146 : vector<2x32xf32>
    %148 = vector.extract_strided_slice %133 {offsets = [0, 96], sizes = [2, 32], strides = [1, 1]} : vector<2x128xf32> to vector<2x32xf32>
    %149 = arith.negf %148 : vector<2x32xf32>
    %150 = math.exp %149 : vector<2x32xf32>
    %cst_64 = arith.constant 1.000000e+00 : f32
    %151 = vector.broadcast %cst_64 : f32 to vector<2x32xf32>
    %152 = arith.addf %151, %150 : vector<2x32xf32>
    %153 = arith.divf %151, %152 : vector<2x32xf32>
    %154 = arith.mulf %145, %91 : vector<2x32xf32>
    %155 = arith.mulf %139, %147 : vector<2x32xf32>
    %156 = arith.addf %154, %155 : vector<2x32xf32>
    %157 = math.tanh %156 : vector<2x32xf32>
    %158 = arith.mulf %153, %157 : vector<2x32xf32>
    %159 = arith.index_cast %98 : i32 to index
    %c0_65 = arith.constant 0 : index
    %160 = vector.load %arg6[%159, %c0_65] : memref<8x32xf32, #tpu.memory_space<vmem>>, vector<2x32xf32>
    tpu.vector_store %arg6[%159, %c0_65], %131 {strides = array<i32>} : memref<8x32xf32, #tpu.memory_space<vmem>>, vector<2x32xf32>,
    %161 = arith.index_cast %100 : i32 to index
    %c0_66 = arith.constant 0 : index
    %162 = vector.load %arg7[%161, %c0_66] : memref<8x32xf32, #tpu.memory_space<vmem>>, vector<2x32xf32>
    tpu.vector_store %arg7[%161, %c0_66], %158 {strides = array<i32>} : memref<8x32xf32, #tpu.memory_space<vmem>>, vector<2x32xf32>,
    %c2_i32_67 = arith.constant 2 : i32
    %c2_i32_68 = arith.constant 2 : i32
    %163 = arith.muli %c2_i32_67, %c2_i32_68 : i32
    %c3_i32_69 = arith.constant 3 : i32
    %164 = arith.subi %c3_i32_69, %c2_i32_67 : i32
    %c2_i32_70 = arith.constant 2 : i32
    %165 = arith.muli %164, %c2_i32_70 : i32
    %166 = arith.index_cast %163 : i32 to index
    %c0_71 = arith.constant 0 : index
    %167 = vector.load %arg10[%166, %c0_71] : memref<8x128xf32, #tpu.memory_space<vmem>>, vector<2x128xf32>
    %168 = arith.index_cast %165 : i32 to index
    %c0_72 = arith.constant 0 : index
    %169 = vector.load %arg11[%168, %c0_72] : memref<8x128xf32, #tpu.memory_space<vmem>>, vector<2x128xf32>
    %cst_73 = arith.constant dense<0.000000e+00> : vector<2x128xf32>
    %170 = tpu.matmul %131, %8, %cst_73 {dimension_numbers = #tpu.dot_dimension_numbers<[1], [0], [0], [1], [0, 0, 1, 1], [], []>} : vector<2x32xf32>, vector<32x128xf32>, vector<2x128xf32> -> vector<2x128xf32>
    %171 = arith.addf %167, %170 : vector<2x128xf32>
    %172 = vector.extract_strided_slice %171 {offsets = [0, 0], sizes = [2, 32], strides = [1, 1]} : vector<2x128xf32> to vector<2x32xf32>
    %173 = arith.negf %172 : vector<2x32xf32>
    %174 = math.exp %173 : vector<2x32xf32>
    %cst_74 = arith.constant 1.000000e+00 : f32
    %175 = vector.broadcast %cst_74 : f32 to vector<2x32xf32>
    %176 = arith.addf %175, %174 : vector<2x32xf32>
    %177 = arith.divf %175, %176 : vector<2x32xf32>
    %178 = vector.extract_strided_slice %171 {offsets = [0, 32], sizes = [2, 32], strides = [1, 1]} : vector<2x128xf32> to vector<2x32xf32>
    %179 = arith.negf %178 : vector<2x32xf32>
    %180 = math.exp %179 : vector<2x32xf32>
    %cst_75 = arith.constant 1.000000e+00 : f32
    %181 = vector.broadcast %cst_75 : f32 to vector<2x32xf32>
    %182 = arith.addf %181, %180 : vector<2x32xf32>
    %183 = arith.divf %181, %182 : vector<2x32xf32>
    %184 = vector.extract_strided_slice %171 {offsets = [0, 64], sizes = [2, 32], strides = [1, 1]} : vector<2x128xf32> to vector<2x32xf32>
    %185 = math.tanh %184 : vector<2x32xf32>
    %186 = vector.extract_strided_slice %171 {offsets = [0, 96], sizes = [2, 32], strides = [1, 1]} : vector<2x128xf32> to vector<2x32xf32>
    %187 = arith.negf %186 : vector<2x32xf32>
    %188 = math.exp %187 : vector<2x32xf32>
    %cst_76 = arith.constant 1.000000e+00 : f32
    %189 = vector.broadcast %cst_76 : f32 to vector<2x32xf32>
    %190 = arith.addf %189, %188 : vector<2x32xf32>
    %191 = arith.divf %189, %190 : vector<2x32xf32>
    %192 = arith.mulf %183, %129 : vector<2x32xf32>
    %193 = arith.mulf %177, %185 : vector<2x32xf32>
    %194 = arith.addf %192, %193 : vector<2x32xf32>
    %195 = math.tanh %194 : vector<2x32xf32>
    %196 = arith.mulf %191, %195 : vector<2x32xf32>
    %cst_77 = arith.constant dense<0.000000e+00> : vector<2x128xf32>
    %197 = tpu.matmul %158, %10, %cst_77 {dimension_numbers = #tpu.dot_dimension_numbers<[1], [0], [0], [1], [0, 0, 1, 1], [], []>} : vector<2x32xf32>, vector<32x128xf32>, vector<2x128xf32> -> vector<2x128xf32>
    %198 = arith.addf %169, %197 : vector<2x128xf32>
    %199 = vector.extract_strided_slice %198 {offsets = [0, 0], sizes = [2, 32], strides = [1, 1]} : vector<2x128xf32> to vector<2x32xf32>
    %200 = arith.negf %199 : vector<2x32xf32>
    %201 = math.exp %200 : vector<2x32xf32>
    %cst_78 = arith.constant 1.000000e+00 : f32
    %202 = vector.broadcast %cst_78 : f32 to vector<2x32xf32>
    %203 = arith.addf %202, %201 : vector<2x32xf32>
    %204 = arith.divf %202, %203 : vector<2x32xf32>
    %205 = vector.extract_strided_slice %198 {offsets = [0, 32], sizes = [2, 32], strides = [1, 1]} : vector<2x128xf32> to vector<2x32xf32>
    %206 = arith.negf %205 : vector<2x32xf32>
    %207 = math.exp %206 : vector<2x32xf32>
    %cst_79 = arith.constant 1.000000e+00 : f32
    %208 = vector.broadcast %cst_79 : f32 to vector<2x32xf32>
    %209 = arith.addf %208, %207 : vector<2x32xf32>
    %210 = arith.divf %208, %209 : vector<2x32xf32>
    %211 = vector.extract_strided_slice %198 {offsets = [0, 64], sizes = [2, 32], strides = [1, 1]} : vector<2x128xf32> to vector<2x32xf32>
    %212 = math.tanh %211 : vector<2x32xf32>
    %213 = vector.extract_strided_slice %198 {offsets = [0, 96], sizes = [2, 32], strides = [1, 1]} : vector<2x128xf32> to vector<2x32xf32>
    %214 = arith.negf %213 : vector<2x32xf32>
    %215 = math.exp %214 : vector<2x32xf32>
    %cst_80 = arith.constant 1.000000e+00 : f32
    %216 = vector.broadcast %cst_80 : f32 to vector<2x32xf32>
    %217 = arith.addf %216, %215 : vector<2x32xf32>
    %218 = arith.divf %216, %217 : vector<2x32xf32>
    %219 = arith.mulf %210, %156 : vector<2x32xf32>
    %220 = arith.mulf %204, %212 : vector<2x32xf32>
    %221 = arith.addf %219, %220 : vector<2x32xf32>
    %222 = math.tanh %221 : vector<2x32xf32>
    %223 = arith.mulf %218, %222 : vector<2x32xf32>
    %224 = arith.index_cast %163 : i32 to index
    %c0_81 = arith.constant 0 : index
    %225 = vector.load %arg6[%224, %c0_81] : memref<8x32xf32, #tpu.memory_space<vmem>>, vector<2x32xf32>
    tpu.vector_store %arg6[%224, %c0_81], %196 {strides = array<i32>} : memref<8x32xf32, #tpu.memory_space<vmem>>, vector<2x32xf32>,
    %226 = arith.index_cast %165 : i32 to index
    %c0_82 = arith.constant 0 : index
    %227 = vector.load %arg7[%226, %c0_82] : memref<8x32xf32, #tpu.memory_space<vmem>>, vector<2x32xf32>
    tpu.vector_store %arg7[%226, %c0_82], %223 {strides = array<i32>} : memref<8x32xf32, #tpu.memory_space<vmem>>, vector<2x32xf32>,
    %c3_i32_83 = arith.constant 3 : i32
    %c2_i32_84 = arith.constant 2 : i32
    %228 = arith.muli %c3_i32_83, %c2_i32_84 : i32
    %c3_i32_85 = arith.constant 3 : i32
    %229 = arith.subi %c3_i32_85, %c3_i32_83 : i32
    %c2_i32_86 = arith.constant 2 : i32
    %230 = arith.muli %229, %c2_i32_86 : i32
    %231 = arith.index_cast %228 : i32 to index
    %c0_87 = arith.constant 0 : index
    %232 = vector.load %arg10[%231, %c0_87] : memref<8x128xf32, #tpu.memory_space<vmem>>, vector<2x128xf32>
    %233 = arith.index_cast %230 : i32 to index
    %c0_88 = arith.constant 0 : index
    %234 = vector.load %arg11[%233, %c0_88] : memref<8x128xf32, #tpu.memory_space<vmem>>, vector<2x128xf32>
    %cst_89 = arith.constant dense<0.000000e+00> : vector<2x128xf32>
    %235 = tpu.matmul %196, %8, %cst_89 {dimension_numbers = #tpu.dot_dimension_numbers<[1], [0], [0], [1], [0, 0, 1, 1], [], []>} : vector<2x32xf32>, vector<32x128xf32>, vector<2x128xf32> -> vector<2x128xf32>
    %236 = arith.addf %232, %235 : vector<2x128xf32>
    %237 = vector.extract_strided_slice %236 {offsets = [0, 0], sizes = [2, 32], strides = [1, 1]} : vector<2x128xf32> to vector<2x32xf32>
    %238 = arith.negf %237 : vector<2x32xf32>
    %239 = math.exp %238 : vector<2x32xf32>
    %cst_90 = arith.constant 1.000000e+00 : f32
    %240 = vector.broadcast %cst_90 : f32 to vector<2x32xf32>
    %241 = arith.addf %240, %239 : vector<2x32xf32>
    %242 = arith.divf %240, %241 : vector<2x32xf32>
    %243 = vector.extract_strided_slice %236 {offsets = [0, 32], sizes = [2, 32], strides = [1, 1]} : vector<2x128xf32> to vector<2x32xf32>
    %244 = arith.negf %243 : vector<2x32xf32>
    %245 = math.exp %244 : vector<2x32xf32>
    %cst_91 = arith.constant 1.000000e+00 : f32
    %246 = vector.broadcast %cst_91 : f32 to vector<2x32xf32>
    %247 = arith.addf %246, %245 : vector<2x32xf32>
    %248 = arith.divf %246, %247 : vector<2x32xf32>
    %249 = vector.extract_strided_slice %236 {offsets = [0, 64], sizes = [2, 32], strides = [1, 1]} : vector<2x128xf32> to vector<2x32xf32>
    %250 = math.tanh %249 : vector<2x32xf32>
    %251 = vector.extract_strided_slice %236 {offsets = [0, 96], sizes = [2, 32], strides = [1, 1]} : vector<2x128xf32> to vector<2x32xf32>
    %252 = arith.negf %251 : vector<2x32xf32>
    %253 = math.exp %252 : vector<2x32xf32>
    %cst_92 = arith.constant 1.000000e+00 : f32
    %254 = vector.broadcast %cst_92 : f32 to vector<2x32xf32>
    %255 = arith.addf %254, %253 : vector<2x32xf32>
    %256 = arith.divf %254, %255 : vector<2x32xf32>
    %257 = arith.mulf %248, %194 : vector<2x32xf32>
    %258 = arith.mulf %242, %250 : vector<2x32xf32>
    %259 = arith.addf %257, %258 : vector<2x32xf32>
    %260 = math.tanh %259 : vector<2x32xf32>
    %261 = arith.mulf %256, %260 : vector<2x32xf32>
    %cst_93 = arith.constant dense<0.000000e+00> : vector<2x128xf32>
    %262 = tpu.matmul %223, %10, %cst_93 {dimension_numbers = #tpu.dot_dimension_numbers<[1], [0], [0], [1], [0, 0, 1, 1], [], []>} : vector<2x32xf32>, vector<32x128xf32>, vector<2x128xf32> -> vector<2x128xf32>
    %263 = arith.addf %234, %262 : vector<2x128xf32>
    %264 = vector.extract_strided_slice %263 {offsets = [0, 0], sizes = [2, 32], strides = [1, 1]} : vector<2x128xf32> to vector<2x32xf32>
    %265 = arith.negf %264 : vector<2x32xf32>
    %266 = math.exp %265 : vector<2x32xf32>
    %cst_94 = arith.constant 1.000000e+00 : f32
    %267 = vector.broadcast %cst_94 : f32 to vector<2x32xf32>
    %268 = arith.addf %267, %266 : vector<2x32xf32>
    %269 = arith.divf %267, %268 : vector<2x32xf32>
    %270 = vector.extract_strided_slice %263 {offsets = [0, 32], sizes = [2, 32], strides = [1, 1]} : vector<2x128xf32> to vector<2x32xf32>
    %271 = arith.negf %270 : vector<2x32xf32>
    %272 = math.exp %271 : vector<2x32xf32>
    %cst_95 = arith.constant 1.000000e+00 : f32
    %273 = vector.broadcast %cst_95 : f32 to vector<2x32xf32>
    %274 = arith.addf %273, %272 : vector<2x32xf32>
    %275 = arith.divf %273, %274 : vector<2x32xf32>
    %276 = vector.extract_strided_slice %263 {offsets = [0, 64], sizes = [2, 32], strides = [1, 1]} : vector<2x128xf32> to vector<2x32xf32>
    %277 = math.tanh %276 : vector<2x32xf32>
    %278 = vector.extract_strided_slice %263 {offsets = [0, 96], sizes = [2, 32], strides = [1, 1]} : vector<2x128xf32> to vector<2x32xf32>
    %279 = arith.negf %278 : vector<2x32xf32>
    %280 = math.exp %279 : vector<2x32xf32>
    %cst_96 = arith.constant 1.000000e+00 : f32
    %281 = vector.broadcast %cst_96 : f32 to vector<2x32xf32>
    %282 = arith.addf %281, %280 : vector<2x32xf32>
    %283 = arith.divf %281, %282 : vector<2x32xf32>
    %284 = arith.mulf %275, %221 : vector<2x32xf32>
    %285 = arith.mulf %269, %277 : vector<2x32xf32>
    %286 = arith.addf %284, %285 : vector<2x32xf32>
    %287 = math.tanh %286 : vector<2x32xf32>
    %288 = arith.mulf %283, %287 : vector<2x32xf32>
    %289 = arith.index_cast %228 : i32 to index
    %c0_97 = arith.constant 0 : index
    %290 = vector.load %arg6[%289, %c0_97] : memref<8x32xf32, #tpu.memory_space<vmem>>, vector<2x32xf32>
    tpu.vector_store %arg6[%289, %c0_97], %261 {strides = array<i32>} : memref<8x32xf32, #tpu.memory_space<vmem>>, vector<2x32xf32>,
    %291 = arith.index_cast %230 : i32 to index
    %c0_98 = arith.constant 0 : index
    %292 = vector.load %arg7[%291, %c0_98] : memref<8x32xf32, #tpu.memory_space<vmem>>, vector<2x32xf32>
    tpu.vector_store %arg7[%291, %c0_98], %288 {strides = array<i32>} : memref<8x32xf32, #tpu.memory_space<vmem>>, vector<2x32xf32>,
    %c4_i32 = arith.constant 4 : i32
    %c0_99 = arith.constant 0 : index
    %c0_100 = arith.constant 0 : index
    %c0_101 = arith.constant 0 : index
    %293 = vector.load %arg8[%c0_99, %c0_100, %c0_101] : memref<2x2x32xf32, #tpu.memory_space<vmem>>, vector<1x2x32xf32>
    %294 = vector.shape_cast %293 : vector<1x2x32xf32> to vector<2x32xf32>
    %295 = vector.shape_cast %261 : vector<2x32xf32> to vector<1x2x32xf32>
    tpu.vector_store %arg8[%c0_99, %c0_100, %c0_101], %295 {strides = array<i32>} : memref<2x2x32xf32, #tpu.memory_space<vmem>>, vector<1x2x32xf32>,
    %c0_102 = arith.constant 0 : index
    %c0_103 = arith.constant 0 : index
    %c0_104 = arith.constant 0 : index
    %296 = vector.load %arg9[%c0_102, %c0_103, %c0_104] : memref<2x2x32xf32, #tpu.memory_space<vmem>>, vector<1x2x32xf32>
    %297 = vector.shape_cast %296 : vector<1x2x32xf32> to vector<2x32xf32>
    %298 = vector.shape_cast %259 : vector<2x32xf32> to vector<1x2x32xf32>
    tpu.vector_store %arg9[%c0_102, %c0_103, %c0_104], %298 {strides = array<i32>} : memref<2x2x32xf32, #tpu.memory_space<vmem>>, vector<1x2x32xf32>,
    %c1_105 = arith.constant 1 : index
    %c0_106 = arith.constant 0 : index
    %c0_107 = arith.constant 0 : index
    %299 = vector.load %arg8[%c1_105, %c0_106, %c0_107] : memref<2x2x32xf32, #tpu.memory_space<vmem>>, vector<1x2x32xf32>
    %300 = vector.shape_cast %299 : vector<1x2x32xf32> to vector<2x32xf32>
    %301 = vector.shape_cast %288 : vector<2x32xf32> to vector<1x2x32xf32>
    tpu.vector_store %arg8[%c1_105, %c0_106, %c0_107], %301 {strides = array<i32>} : memref<2x2x32xf32, #tpu.memory_space<vmem>>, vector<1x2x32xf32>,
    %c1_108 = arith.constant 1 : index
    %c0_109 = arith.constant 0 : index
    %c0_110 = arith.constant 0 : index
    %302 = vector.load %arg9[%c1_108, %c0_109, %c0_110] : memref<2x2x32xf32, #tpu.memory_space<vmem>>, vector<1x2x32xf32>
    %303 = vector.shape_cast %302 : vector<1x2x32xf32> to vector<2x32xf32>
    %304 = vector.shape_cast %286 : vector<2x32xf32> to vector<1x2x32xf32>
    tpu.vector_store %arg9[%c1_108, %c0_109, %c0_110], %304 {strides = array<i32>} : memref<2x2x32xf32, #tpu.memory_space<vmem>>, vector<1x2x32xf32>,
    return
  }
  func.func @transform_0(%arg0: i32) -> (i32, i32) {
    %c0_i32 = arith.constant 0 : i32
    %c0_i32_0 = arith.constant 0 : i32
    return %arg0, %c0_i32 : i32, i32
  }
  func.func @transform_1(%arg0: i32) -> (i32, i32) {
    %c1_i32 = arith.constant 1 : i32
    %0 = arith.subi %c1_i32, %arg0 : i32
    %c0_i32 = arith.constant 0 : i32
    %c0_i32_0 = arith.constant 0 : i32
    return %0, %c0_i32 : i32, i32
  }
  func.func @transform_2(%arg0: i32) -> (i32, i32, i32) {
    %c0_i32 = arith.constant 0 : i32
    %c0_i32_0 = arith.constant 0 : i32
    %c0_i32_1 = arith.constant 0 : i32
    %c0_i32_2 = arith.constant 0 : i32
    return %c0_i32, %c0_i32_0, %c0_i32_1 : i32, i32, i32
  }
  func.func @transform_3(%arg0: i32) -> (i32, i32, i32) {
    %c0_i32 = arith.constant 0 : i32
    %c0_i32_0 = arith.constant 0 : i32
    %c0_i32_1 = arith.constant 0 : i32
    %c0_i32_2 = arith.constant 0 : i32
    return %c0_i32, %c0_i32_0, %c0_i32_1 : i32, i32, i32
  }
  func.func @transform_4(%arg0: i32) -> (i32, i32, i32) {
    %c0_i32 = arith.constant 0 : i32
    %c0_i32_0 = arith.constant 0 : i32
    %c0_i32_1 = arith.constant 0 : i32
    %c0_i32_2 = arith.constant 0 : i32
    return %c0_i32, %c0_i32_0, %c0_i32_1 : i32, i32, i32
  }
  func.func @transform_5(%arg0: i32) -> (i32, i32) {
    %c0_i32 = arith.constant 0 : i32
    %c0_i32_0 = arith.constant 0 : i32
    return %arg0, %c0_i32 : i32, i32
  }
  func.func @transform_6(%arg0: i32) -> (i32, i32) {
    %c1_i32 = arith.constant 1 : i32
    %0 = arith.subi %c1_i32, %arg0 : i32
    %c0_i32 = arith.constant 0 : i32
    %c0_i32_0 = arith.constant 0 : i32
    return %0, %c0_i32 : i32, i32
  }
}

</mosaic_0001>

<bundles_post_ra>
// kernel: bidirectional_lstm_encoder.2
= control target key start
LH: loop header
LB: loop body
LE: loop exit
PB: predicated region body
PF: predicated region fallthrough
CT: control target
= control target key end

     0   :  { %s1799_s21 = smov 0   ;;  %s2005_s0 = inlined_call_operand.vmem [shape: f32[16,16], index: 0, kind: input, shape index: {}, may-alias: {0,1}]   ;;  %s2006_s1 = inlined_call_operand.vmem [shape: f32[16,16], index: 1, kind: input, shape index: {}, may-alias: {0,1}]   ;;  %s2007_s2 = inlined_call_operand.vmem [shape: f32[2,16,128], index: 2, kind: input, shape index: {}]   ;;  %s2008_s3 = inlined_call_operand.vmem [shape: f32[2,32,128], index: 3, kind: input, shape index: {}]   ;;  %s2009_s4 = inlined_call_operand.vmem [shape: f32[2,1,128], index: 4, kind: input, shape index: {}]   ;;  %s2010_s5 = inlined_call_operand.vmem [shape: f32[16,32], index: 5, kind: output, shape index: {0}]   ;;  %s2011_s6 = inlined_call_operand.vmem [shape: f32[16,32], index: 6, kind: output, shape index: {1}]  }
   0x1 LB: > { %s1429_s22 = sadd.s32 4294967295, %s1755_s21   ;;  %p1433_p0 = scmp.ge.s32.totalorder %s1755_s21, 1  ;;  %s1755_s21 = sphi %s1799_s21, %s17_s21  }
   0x2   : > { %p229_p1 = scmp.lt.s32.totalorder %s1755_s21, 3 }
   0x4   : > { %p230_p2 = pnand %p1433_p0, %p229_p1 }
   0x5   : > { %p267_p3 = scmp.lt.s32.totalorder (!%p230_p2), %s1429_s22, 1  ;;  %s271_s23 = ssub.s32 (!%p230_p2), 1, %s1429_s22 }
   0x6   : > { %233 = sbr.rel (%p230_p2) target bundleno = 2854 (0xb26), region = 40  ;;  %p272_p4 = scmp.lt.s32.totalorder (!%p230_p2), %s271_s23, 1 }
   0x7   : > { %p1438_p5 = scmp.ne.s32.totalorder (!%p230_p2), %s1429_s22, 0 }
   0xd   : > { %s268_s24 = scalar_select %p267_p3, %s1429_s22, 1 }
   0xe   : > { %s2013_s23 = smov (!%p272_p4, %s271_s23), 1  ;;  %290 = sbr.rel (%p1438_p5) target bundleno = 21 (0x15), region = 44 }
   0xf   : > { %s1434_s25 = sshll.u32 %s268_s24, 3  ;;  %s1435_s29 = sshll.u32 %s2013_s23, 3  ;;  %vm291_vm0 = vcmask (!%p1438_p5), 254976   ;;  %v1757_v0 = vmov (!%p1438_p5), 0.0  }
  0x10   : > { %s270_s28 = scalar_lea.vmem %s2005_s0, %s1434_s25  ;;  %s1813_s8 = scalar_lea.vmem %s2006_s1, %s1435_s29  ;;  %292 = vst.msk [vmem:[#allocation2] sm:$0x3] (!%p1438_p5), %vm291_vm0, %v1757_v0  ;;  %293 = vst.msk [vmem:[#allocation2 + $0x2] sm:$0x3] (!%p1438_p5), %vm291_vm0, %v1757_v0 }
  0x11   : > { %s1818_s11 = scalar_lea.vmem %s2010_s5, %s1434_s25  ;;  %s1823_s14 = scalar_lea.vmem %s2011_s6, %s1435_s29  ;;  %294 = vst.msk [vmem:[#allocation3] sm:$0x3] (!%p1438_p5), %vm291_vm0, %v1757_v0  ;;  %295 = vst.msk [vmem:[#allocation3 + $0x2] sm:$0x3] (!%p1438_p5), %vm291_vm0, %v1757_v0 }
  0x15 PF: > { %v296_v1 = vld [vmem:[%s2007_s2] sm:$0xff]  ;;  %v297_v2 = vld [vmem:[%s2007_s2 + $0x8] sm:$0xff]  ;;  %v1758_v3 = vmov 0.0|0.0   ;;  %vm1759_vm1 = vmmov 0   ;;  %v1760_v5 = vmov 0.0   ;;  %v1439_v6 = vld [vmem:[%s2007_s2 + $0x10] sm:$0xff] }
  0x16   : > { %1616 = vmatprep.subr.bf16.mxu0 %v1758_v3  ;;  %v1617_v4 = vpack.c.bf16 %v297_v2, %v296_v1  ;;  %1518 = vmatprep.mubr.msk.f32.mxu0 %vm1759_vm1, %v1760_v5  ;;  %v1440_v7 = vld [vmem:[%s2007_s2 + $0x18] sm:$0xff]  ;;  %v301_v8 = vld [vmem:[%s2008_s3] sm:$0xff]  ;;  %v302_v10 = vld [vmem:[%s2008_s3 + $0x8] sm:$0xff]  ;;  %vm320_vm2 = vcmask 130048   ;;  %vm484_vm3 = vcmask 261120   ;;  %s1762_s24 = smov 64  }
  0x17   : > { %1619 = vmatprep.subr.bf16.mxu1 %v1758_v3  ;;  %v1620_v9 = vpack.c.bf16 %v1440_v7, %v1439_v6  ;;  %1525 = vmatprep.mubr.msk.f32.mxu1 %vm1759_vm1, %v1760_v5  ;;  %v313_v11 = vld [vmem:[%s270_s28] sm:$0xff]  ;;  %v1849_v12 = vpack.c.bf16 %v302_v10, %v301_v8  ;;  %v1442_v14 = vld [vmem:[%s2008_s3 + $0x28] sm:$0xff]  ;;  %v303_v16 = vld [vmem:[%s2008_s3 + $0x10] sm:$0xff]  ;;  %vm693_vm4 = vcmask 254976   ;;  %s1763_s25 = smov 96  }
  0x18   : > { %1618 = vmatpush3.bf16.msra.mxu0 %v1617_v4  ;;  %v1441_v13 = vld [vmem:[%s2008_s3 + $0x20] sm:$0xff]  ;;  %v304_v17 = vld [vmem:[%s2008_s3 + $0x18] sm:$0xff]  ;;  %v1443_v19 = vld [vmem:[%s2008_s3 + $0x30] sm:$0xff] }
  0x19   : > { %1621 = vmatpush3.bf16.msra.mxu1 %v1620_v9  ;;  %1622 = vmatprep.subr.bf16.mxu0 %v1758_v3  ;;  %v395_v15 = vld [vmem:[%s1813_s8] sm:$0xff]  ;;  %v1865_v18 = vpack.c.bf16 %v1442_v14, %v1441_v13  ;;  %v1444_v20 = vld [vmem:[%s2008_s3 + $0x38] sm:$0xff]  ;;  %s1761_s8 = smov 32   ;;  %v1878_v22 = vpack.c.bf16 %v304_v17, %v303_v16 }
  0x1a   : > { %1628 = vmatprep.subr.bf16.mxu1 %v1758_v3  ;;  %v477_v21 = vld [vmem:[#allocation3] sm:$0x3]  ;;  %v481_v23 = vld [vmem:[#allocation3 + $0x2] sm:$0x3]  ;;  %v1882_v24 = vpack.c.bf16 %v1444_v20, %v1443_v19  ;;  %v476_v25 = vld [vmem:[#allocation2] sm:$0x3] }
  0x1b   : > { %1519 = vmatmul.mubr.msk.f32.vlgmr.msra.gmra.mrb[0].mxu0 %vm320_vm2, %v313_v11  ;;  %567 = vrot.lane.b32.xlu1 %v477_v21, %s1761_s8  ;;  %v479_v26 = vld [vmem:[#allocation2 + $0x2] sm:$0x3]  ;;  %v1446_v27 = vld [vmem:[%s2009_s4] ss:$0 sm:$0xff]  ;;  %v1448_v28 = vld [vmem:[%s2009_s4 + $0x1] ss:$0 sm:$0xff] }
  0x1c   : > { %1624 = vmatpush3.bf16.msra.mxu0 %v1849_v12  ;;  %1526 = vmatmul.mubr.msk.f32.vlgmr.msra.gmra.mrb[0].mxu1 %vm320_vm2, %v395_v15 }
  0x1d   : > { %1625 = vmatprep.subr.bf16.mxu0 %v1758_v3  ;;  %1630 = vmatpush3.bf16.msra.mxu1 %v1865_v18 }
  0x1e   : > { %1536 = vmatprep.mubr.msk.f32.mxu0 %vm1759_vm1, %v1760_v5  ;;  %1631 = vmatprep.subr.bf16.mxu1 %v1758_v3 }
  0x1f   : > { %1547 = vmatprep.mubr.msk.f32.mxu1 %vm1759_vm1, %v1760_v5  ;;  %669 = vrot.lane.b32.xlu1 %v481_v23, %s1761_s8 }
  0x20   : > { %1627 = vmatpush3.bf16.msra.mxu0 %v1878_v22 }
  0x21   : > { %1633 = vmatpush3.bf16.msra.mxu1 %v1882_v24  ;;  %1634 = vmatprep.subr.bf16.mxu0 %v1758_v3 }
  0x22   : > { %1640 = vmatprep.subr.bf16.mxu1 %v1758_v3 }
  0x23   : > { %1537 = vmatmul.mubr.msk.f32.vlgmr.msra.gmra.mrb[2].mxu0 %vm484_vm3, %v476_v25 }
  0x24   : > { %1548 = vmatmul.mubr.msk.f32.vlgmr.msra.gmra.mrb[2].mxu1 %vm484_vm3, %v479_v26  ;;  %1636 = vmatpush3.bf16.msra.mxu0 %v1849_v12 }
  0x25   : > { %1637 = vmatprep.subr.bf16.mxu0 %v1758_v3  ;;  %1642 = vmatpush3.bf16.msra.mxu1 %v1865_v18 }
  0x26   : > { %1558 = vmatprep.mubr.msk.f32.mxu0 %vm1759_vm1, %v1760_v5  ;;  %1643 = vmatprep.subr.bf16.mxu1 %v1758_v3 }
  0x27   : > { %1569 = vmatprep.mubr.msk.f32.mxu1 %vm1759_vm1, %v1760_v5 }
  0x28   : > { %1639 = vmatpush3.bf16.msra.mxu0 %v1878_v22 }
  0x29   : > { %1645 = vmatpush3.bf16.msra.mxu1 %v1882_v24  ;;  %1646 = vmatprep.subr.bf16.mxu0 %v1758_v3 }
  0x2a   : > { %1652 = vmatprep.subr.bf16.mxu1 %v1758_v3 }
  0x8d   : > { %v568_v57 = vpop.permute.xlu1 %567 }
  0x91   : > { %v670_v59 = vpop.permute.xlu1 %669 }
  0xee   : > { %v390_v29 = vpop.f32.mrb[0].mxu0 }
  0xef   : > { %v391_v30 = vadd.f32 %v1446_v27, %v390_v29  ;;  %v1520_v31 = vpop.f32.mrb[1].mxu0  ;;  %v471_v32 = vpop.f32.mrb[0].mxu1 }
  0xf0   : > { %v472_v33 = vadd.f32 %v1448_v28, %v471_v32  ;;  %v1527_v34 = vpop.f32.mrb[1].mxu1 }
  0xf1   : > { %394 = vst [vmem:[#allocation4] sm:$0xff] %v391_v30 }
  0xf2   : > { %475 = vst [vmem:[#allocation5] sm:$0xff] %v472_v33 }
  0xf6   : > { %v554_v35 = vpop.f32.mrb[2].mxu0 }
  0xf7   : > { %v1538_v36 = vpop.f32.mrb[3].mxu0  ;;  %v656_v37 = vpop.f32.mrb[2].mxu1 }
  0xf8   : > { %v482_v38 = vld [vmem:[#allocation4] sm:$0x3]  ;;  %v1549_v39 = vpop.f32.mrb[3].mxu1  ;;  %v700_v11 = vld [vmem:[#allocation4 + $0x2] sm:$0x3] }
  0xf9   : > { %v558_v40 = vadd.f32 %v554_v35, %v482_v38  ;;  %v483_v41 = vld [vmem:[#allocation5 + $0x6] sm:$0x3]  ;;  %v701_v16 = vld [vmem:[#allocation5 + $0x4] sm:$0x3] }
  0xfa   : > { %v660_v42 = vadd.f32 %v656_v37, %v483_v41 }
  0xfb   : > { %1685 = vtanh.f32 %v558_v40  ;;  %v1451_v45 = vmul.f32 -1.442695, %v558_v40 }
  0xfc   : > { %1687 = vtanh.f32 %v660_v42  ;;  %v1453_v46 = vmul.f32 -1.442695, %v660_v42 }
  0xfd   : > { %1689 = vpow2.f32 %v1451_v45 }
  0xfe   : > { %1691 = vpow2.f32 %v1453_v46 }
 0x105   : > { %v1686_v43 = vpop.eup %1685 }
 0x106   : > { %572 = vrot.lane.b32.xlu0 %v1686_v43, %s1762_s24  ;;  %v1688_v44 = vpop.eup %1687 }
 0x107   : > { %v1690_v47 = vpop.eup %1689 }
 0x108   : > { %v562_v48 = vadd.f32 1.0, %v1690_v47  ;;  %v1692_v49 = vpop.eup %1691 }
 0x109   : > { %v664_v50 = vadd.f32 1.0, %v1692_v49 }
 0x10a   : > { %674 = vrot.lane.b32.xlu0 %v1688_v44, %s1762_s24  ;;  %1693 = vrcp.f32 %v562_v48 }
 0x10b   : > { %1695 = vrcp.f32 %v664_v50 }
 0x114   : > { %v1694_v51 = vpop.eup %1693 }
 0x115   : > { %v1696_v54 = vpop.eup %1695  ;;  %v570_v58 = vmul.f32 %v1694_v51, %v568_v57 }
 0x116   : > { %v672_v62 = vmul.f32 %v1696_v54, %v670_v59 }
 0x178   : > { %v573_v52 = vpop.permute.xlu0 %572 }
 0x179   : > { %v575_v53 = vmul.f32 %v1694_v51, %v573_v52 }
 0x17b   : > { %577 = vrot.lane.b32.xlu0 %v575_v53, %s1761_s8 }
 0x17c   : > { %v675_v55 = vpop.permute.xlu0 %674 }
 0x17d   : > { %v677_v56 = vmul.f32 %v1696_v54, %v675_v55 }
 0x17f   : > { %679 = vrot.lane.b32.xlu1 %v677_v56, %s1761_s8 }
 0x1ed   : > { %v578_v60 = vpop.permute.xlu0 %577 }
 0x1ee   : > { %v1918_v61 = vadd.f32 %v578_v60, %v570_v58 }
 0x1f0   : > { %1697 = vtanh.f32 %v1918_v61 }
 0x1f1   : > { %v680_v63 = vpop.permute.xlu1 %679 }
 0x1f2   : > { %v1921_v0 = vadd.f32 %v680_v63, %v672_v62 }
 0x1f4   : > { %1699 = vtanh.f32 %v1921_v0 }
 0x1fa   : > { %v1698_v1 = vpop.eup %1697 }
 0x1fb   : > { %583 = vrot.lane.b32.xlu0 %v1698_v1, %s1762_s24 }
 0x1fe   : > { %v1700_v2 = vpop.eup %1699 }
 0x1ff   : > { %685 = vrot.lane.b32.xlu1 %v1700_v2, %s1762_s24 }
 0x26d   : > { %v584_v4 = vpop.permute.xlu0 %583 }
 0x26e   : > { %v586_v6 = vmul.f32 %v1694_v51, %v584_v4 }
 0x270   : > { %690 = vrot.lane.b32.xlu0 %v586_v6, %s1761_s8 }
 0x271   : > { %v686_v7 = vpop.permute.xlu1 %685 }
 0x272   : > { %v688_v8 = vmul.f32 %v1696_v54, %v686_v7  ;;  %v907_v54 = vld [vmem:[#allocation5 + $0x2] sm:$0x3] }
 0x274   : > { %696 = vrot.lane.b32.xlu1 %v688_v8, %s1761_s8 }
 0x2e2   : > { %v691_v9 = vpop.permute.xlu0 %690 }
 0x2e3   : > { %694 = vst.msk [vmem:[%s1818_s11] sm:$0x3] %vm693_vm4, %v691_v9  ;;  %1559 = vmatmul.mubr.msk.f32.vlgmr.msra.gmra.mrb[4].mxu0 %vm484_vm3, %v691_v9 }
 0x2e4   : > { %1648 = vmatpush3.bf16.msra.mxu0 %v1849_v12  ;;  %1580 = vmatprep.mubr.msk.f32.mxu0 %vm1759_vm1, %v1760_v5 }
 0x2e5   : > { %1649 = vmatprep.subr.bf16.mxu0 %v1758_v3 }
 0x2e6   : > { %v697_v10 = vpop.permute.xlu1 %696 }
 0x2e7   : > { %699 = vst.msk [vmem:[%s1823_s14 + $0x6] sm:$0x3] %vm693_vm4, %v697_v10  ;;  %1570 = vmatmul.mubr.msk.f32.vlgmr.msra.gmra.mrb[4].mxu1 %vm484_vm3, %v697_v10 }
 0x2e8   : > { %1651 = vmatpush3.bf16.msra.mxu0 %v1878_v22  ;;  %1654 = vmatpush3.bf16.msra.mxu1 %v1865_v18 }
 0x2e9   : > { %1655 = vmatprep.subr.bf16.mxu1 %v1758_v3  ;;  %1591 = vmatprep.mubr.msk.f32.mxu1 %vm1759_vm1, %v1760_v5 }
 0x2ea   : > { %1658 = vmatprep.subr.bf16.mxu0 %v1758_v3 }
 0x2ec   : > { %1657 = vmatpush3.bf16.msra.mxu1 %v1882_v24 }
 0x2ed   : > { %1664 = vmatprep.subr.bf16.mxu1 %v1758_v3 }
 0x3b6   : > { %v770_v13 = vpop.f32.mrb[4].mxu0 }
 0x3b7   : > { %v774_v14 = vadd.f32 %v770_v13, %v700_v11  ;;  %v1560_v15 = vpop.f32.mrb[5].mxu0 }
 0x3b9   : > { %1701 = vtanh.f32 %v774_v14  ;;  %v1455_v25 = vmul.f32 -1.442695, %v774_v14 }
 0x3ba   : > { %v867_v17 = vpop.f32.mrb[4].mxu1 }
 0x3bb   : > { %v871_v19 = vadd.f32 %v867_v17, %v701_v16  ;;  %v1571_v20 = vpop.f32.mrb[5].mxu1 }
 0x3bd   : > { %1703 = vtanh.f32 %v871_v19  ;;  %v1457_v26 = vmul.f32 -1.442695, %v871_v19 }
 0x3be   : > { %1705 = vpow2.f32 %v1455_v25 }
 0x3bf   : > { %1707 = vpow2.f32 %v1457_v26 }
 0x3c3   : > { %v1702_v21 = vpop.eup %1701 }
 0x3c4   : > { %784 = vrot.lane.b32.xlu0 %v1702_v21, %s1762_s24  ;;  %v1112_v21 = vld [vmem:[#allocation4 + $0x6] sm:$0x3] }
 0x3c7   : > { %v1704_v23 = vpop.eup %1703 }
 0x3c8   : > { %881 = vrot.lane.b32.xlu1 %v1704_v23, %s1762_s24  ;;  %v1706_v27 = vpop.eup %1705 }
 0x3c9   : > { %v778_v28 = vadd.f32 1.0, %v1706_v27  ;;  %v1708_v29 = vpop.eup %1707  ;;  %v1113_v27 = vld [vmem:[#allocation5] sm:$0x3] }
 0x3ca   : > { %v875_v30 = vadd.f32 1.0, %v1708_v29 }
 0x3cb   : > { %1709 = vrcp.f32 %v778_v28 }
 0x3cc   : > { %1711 = vrcp.f32 %v875_v30 }
 0x3d5   : > { %v1710_v31 = vpop.eup %1709 }
 0x3d6   : > { %v1712_v34 = vpop.eup %1711  ;;  %v782_v37 = vmul.f32 %v1710_v31, %v1918_v61 }
 0x3d7   : > { %v879_v40 = vmul.f32 %v1712_v34, %v1921_v0 }
 0x436   : > { %v785_v32 = vpop.permute.xlu0 %784 }
 0x437   : > { %v787_v33 = vmul.f32 %v1710_v31, %v785_v32 }
 0x439   : > { %789 = vrot.lane.b32.xlu0 %v787_v33, %s1761_s8 }
 0x43a   : > { %v882_v35 = vpop.permute.xlu1 %881 }
 0x43b   : > { %v884_v36 = vmul.f32 %v1712_v34, %v882_v35 }
 0x43d   : > { %886 = vrot.lane.b32.xlu1 %v884_v36, %s1761_s8 }
 0x4ab   : > { %v790_v38 = vpop.permute.xlu0 %789 }
 0x4ac   : > { %v792_v39 = vadd.f32 %v790_v38, %v782_v37 }
 0x4ae   : > { %1713 = vtanh.f32 %v792_v39 }
 0x4af   : > { %v887_v41 = vpop.permute.xlu1 %886 }
 0x4b0   : > { %v889_v42 = vadd.f32 %v887_v41, %v879_v40 }
 0x4b2   : > { %1715 = vtanh.f32 %v889_v42 }
 0x4b8   : > { %v1714_v43 = vpop.eup %1713 }
 0x4b9   : > { %795 = vrot.lane.b32.xlu0 %v1714_v43, %s1762_s24 }
 0x4bc   : > { %v1716_v44 = vpop.eup %1715 }
 0x4bd   : > { %892 = vrot.lane.b32.xlu1 %v1716_v44, %s1762_s24 }
 0x52b   : > { %v796_v45 = vpop.permute.xlu0 %795 }
 0x52c   : > { %v798_v46 = vmul.f32 %v1710_v31, %v796_v45 }
 0x52e   : > { %897 = vrot.lane.b32.xlu0 %v798_v46, %s1761_s8 }
 0x52f   : > { %v893_v47 = vpop.permute.xlu1 %892 }
 0x530   : > { %v895_v48 = vmul.f32 %v1712_v34, %v893_v47 }
 0x532   : > { %902 = vrot.lane.b32.xlu1 %v895_v48, %s1761_s8 }
 0x5a0   : > { %v898_v49 = vpop.permute.xlu0 %897 }
 0x5a1   : > { %900 = vst.msk [vmem:[%s1818_s11 + $0x2] sm:$0x3] %vm693_vm4, %v898_v49  ;;  %1581 = vmatmul.mubr.msk.f32.vlgmr.msra.gmra.mrb[6].mxu0 %vm484_vm3, %v898_v49 }
 0x5a2   : > { %1660 = vmatpush3.bf16.msra.mxu0 %v1849_v12  ;;  %1602 = vmatprep.mubr.msk.f32.mxu0 %vm1759_vm1, %v1760_v5  ;;  %v906_v12 = vld [vmem:[#allocation4 + $0x4] sm:$0x3] }
 0x5a3   : > { %1661 = vmatprep.subr.bf16.mxu0 %v1758_v3 }
 0x5a4   : > { %v903_v50 = vpop.permute.xlu1 %902 }
 0x5a5   : > { %905 = vst.msk [vmem:[%s1823_s14 + $0x4] sm:$0x3] %vm693_vm4, %v903_v50  ;;  %1592 = vmatmul.mubr.msk.f32.vlgmr.msra.gmra.mrb[6].mxu1 %vm484_vm3, %v903_v50 }
 0x5a6   : > { %1663 = vmatpush3.bf16.msra.mxu0 %v1878_v22  ;;  %1666 = vmatpush3.bf16.msra.mxu1 %v1865_v18 }
 0x5a7   : > { %1667 = vmatprep.subr.bf16.mxu1 %v1758_v3  ;;  %1613 = vmatprep.mubr.msk.f32.mxu1 %vm1759_vm1, %v1760_v5 }
 0x5aa   : > { %1669 = vmatpush3.bf16.msra.mxu1 %v1882_v24 }
 0x674   : > { %v976_v51 = vpop.f32.mrb[6].mxu0 }
 0x675   : > { %v980_v52 = vadd.f32 %v976_v51, %v906_v12  ;;  %v1582_v53 = vpop.f32.mrb[7].mxu0 }
 0x677   : > { %1717 = vtanh.f32 %v980_v52  ;;  %v1459_v3 = vmul.f32 -1.442695, %v980_v52 }
 0x678   : > { %v1073_v55 = vpop.f32.mrb[6].mxu1 }
 0x679   : > { %v1077_v56 = vadd.f32 %v1073_v55, %v907_v54  ;;  %v1593_v57 = vpop.f32.mrb[7].mxu1 }
 0x67b   : > { %1719 = vtanh.f32 %v1077_v56  ;;  %v1461_v5 = vmul.f32 -1.442695, %v1077_v56 }
 0x67c   : > { %1721 = vpow2.f32 %v1459_v3 }
 0x67d   : > { %1723 = vpow2.f32 %v1461_v5 }
 0x681   : > { %v1718_v22 = vpop.eup %1717 }
 0x682   : > { %990 = vrot.lane.b32.xlu0 %v1718_v22, %s1762_s24 }
 0x685   : > { %v1720_v18 = vpop.eup %1719 }
 0x686   : > { %1087 = vrot.lane.b32.xlu1 %v1720_v18, %s1762_s24  ;;  %v1722_v24 = vpop.eup %1721 }
 0x687   : > { %v984_v58 = vadd.f32 1.0, %v1722_v24  ;;  %v1724_v59 = vpop.eup %1723 }
 0x688   : > { %v1081_v60 = vadd.f32 1.0, %v1724_v59 }
 0x689   : > { %1725 = vrcp.f32 %v984_v58 }
 0x68a   : > { %1727 = vrcp.f32 %v1081_v60 }
 0x693   : > { %v1726_v61 = vpop.eup %1725 }
 0x694   : > { %v1728_v0 = vpop.eup %1727  ;;  %v988_v4 = vmul.f32 %v1726_v61, %v792_v39 }
 0x695   : > { %v1085_v8 = vmul.f32 %v1728_v0, %v889_v42 }
 0x6f4   : > { %v991_v62 = vpop.permute.xlu0 %990 }
 0x6f5   : > { %v993_v63 = vmul.f32 %v1726_v61, %v991_v62 }
 0x6f7   : > { %995 = vrot.lane.b32.xlu0 %v993_v63, %s1761_s8 }
 0x6f8   : > { %v1088_v1 = vpop.permute.xlu1 %1087 }
 0x6f9   : > { %v1090_v2 = vmul.f32 %v1728_v0, %v1088_v1 }
 0x6fb   : > { %1092 = vrot.lane.b32.xlu1 %v1090_v2, %s1761_s8 }
 0x769   : > { %v996_v6 = vpop.permute.xlu0 %995 }
 0x76a   : > { %v998_v7 = vadd.f32 %v996_v6, %v988_v4 }
 0x76c   : > { %1729 = vtanh.f32 %v998_v7 }
 0x76d   : > { %v1093_v9 = vpop.permute.xlu1 %1092 }
 0x76e   : > { %v1095_v10 = vadd.f32 %v1093_v9, %v1085_v8 }
 0x770   : > { %1731 = vtanh.f32 %v1095_v10 }
 0x776   : > { %v1730_v11 = vpop.eup %1729 }
 0x777   : > { %1001 = vrot.lane.b32.xlu0 %v1730_v11, %s1762_s24 }
 0x77a   : > { %v1732_v13 = vpop.eup %1731 }
 0x77b   : > { %1098 = vrot.lane.b32.xlu1 %v1732_v13, %s1762_s24 }
 0x7e9   : > { %v1002_v14 = vpop.permute.xlu0 %1001 }
 0x7ea   : > { %v1004_v15 = vmul.f32 %v1726_v61, %v1002_v14 }
 0x7ec   : > { %1103 = vrot.lane.b32.xlu0 %v1004_v15, %s1761_s8 }
 0x7ed   : > { %v1099_v16 = vpop.permute.xlu1 %1098 }
 0x7ee   : > { %v1101_v17 = vmul.f32 %v1728_v0, %v1099_v16 }
 0x7f0   : > { %1108 = vrot.lane.b32.xlu1 %v1101_v17, %s1761_s8 }
 0x85e   : > { %v1104_v19 = vpop.permute.xlu0 %1103 }
 0x85f   : > { %1106 = vst.msk [vmem:[%s1818_s11 + $0x4] sm:$0x3] %vm693_vm4, %v1104_v19  ;;  %1603 = vmatmul.mubr.msk.f32.vlgmr.msra.gmra.mrb[8].mxu0 %vm484_vm3, %v1104_v19 }
 0x862   : > { %v1109_v20 = vpop.permute.xlu1 %1108 }
 0x863   : > { %1111 = vst.msk [vmem:[%s1823_s14 + $0x2] sm:$0x3] %vm693_vm4, %v1109_v20  ;;  %1614 = vmatmul.mubr.msk.f32.vlgmr.msra.gmra.mrb[8].mxu1 %vm484_vm3, %v1109_v20 }
 0x932   : > { %v1182_v23 = vpop.f32.mrb[8].mxu0 }
 0x933   : > { %v1186_v25 = vadd.f32 %v1182_v23, %v1112_v21  ;;  %v1604_v26 = vpop.f32.mrb[9].mxu0 }
 0x935   : > { %1733 = vtanh.f32 %v1186_v25  ;;  %v1463_v33 = vmul.f32 -1.442695, %v1186_v25 }
 0x936   : > { %v1279_v28 = vpop.f32.mrb[8].mxu1 }
 0x937   : > { %v1283_v29 = vadd.f32 %v1279_v28, %v1113_v27  ;;  %v1615_v30 = vpop.f32.mrb[9].mxu1 }
 0x939   : > { %1735 = vtanh.f32 %v1283_v29  ;;  %v1465_v34 = vmul.f32 -1.442695, %v1283_v29 }
 0x93a   : > { %1737 = vpow2.f32 %v1463_v33 }
 0x93b   : > { %1739 = vpow2.f32 %v1465_v34 }
 0x93f   : > { %v1734_v31 = vpop.eup %1733 }
 0x940   : > { %1196 = vrot.lane.b32.xlu0 %v1734_v31, %s1762_s24 }
 0x943   : > { %v1736_v32 = vpop.eup %1735 }
 0x944   : > { %1293 = vrot.lane.b32.xlu1 %v1736_v32, %s1762_s24  ;;  %v1738_v35 = vpop.eup %1737 }
 0x945   : > { %v1190_v36 = vadd.f32 1.0, %v1738_v35  ;;  %v1740_v37 = vpop.eup %1739 }
 0x946   : > { %v1287_v38 = vadd.f32 1.0, %v1740_v37 }
 0x947   : > { %1741 = vrcp.f32 %v1190_v36 }
 0x948   : > { %1743 = vrcp.f32 %v1287_v38 }
 0x951   : > { %v1742_v39 = vpop.eup %1741 }
 0x952   : > { %v1744_v42 = vpop.eup %1743  ;;  %v1194_v45 = vmul.f32 %v1742_v39, %v998_v7 }
 0x953   : > { %v1291_v48 = vmul.f32 %v1744_v42, %v1095_v10 }
 0x9b2   : > { %v1197_v40 = vpop.permute.xlu0 %1196 }
 0x9b3   : > { %v1199_v41 = vmul.f32 %v1742_v39, %v1197_v40 }
 0x9b5   : > { %1201 = vrot.lane.b32.xlu0 %v1199_v41, %s1761_s8 }
 0x9b6   : > { %v1294_v43 = vpop.permute.xlu1 %1293 }
 0x9b7   : > { %v1296_v44 = vmul.f32 %v1744_v42, %v1294_v43 }
 0x9b9   : > { %1298 = vrot.lane.b32.xlu1 %v1296_v44, %s1761_s8 }
 0xa27   : > { %v1202_v46 = vpop.permute.xlu0 %1201 }
 0xa28   : > { %v1204_v47 = vadd.f32 %v1202_v46, %v1194_v45 }
 0xa2a   : > { %1745 = vtanh.f32 %v1204_v47 }
 0xa2b   : > { %v1299_v49 = vpop.permute.xlu1 %1298 }
 0xa2c   : > { %v1301_v50 = vadd.f32 %v1299_v49, %v1291_v48 }
 0xa2e   : > { %1747 = vtanh.f32 %v1301_v50 }
 0xa34   : > { %v1746_v12 = vpop.eup %1745 }
 0xa35   : > { %1207 = vrot.lane.b32.xlu0 %v1746_v12, %s1762_s24 }
 0xa38   : > { %v1748_v51 = vpop.eup %1747 }
 0xa39   : > { %1304 = vrot.lane.b32.xlu1 %v1748_v51, %s1762_s24 }
 0xaa7   : > { %v1208_v52 = vpop.permute.xlu0 %1207 }
 0xaa8   : > { %v1210_v53 = vmul.f32 %v1742_v39, %v1208_v52 }
 0xaaa   : > { %1309 = vrot.lane.b32.xlu0 %v1210_v53, %s1761_s8 }
 0xaab   : > { %v1305_v54 = vpop.permute.xlu1 %1304 }
 0xaac   : > { %v1307_v55 = vmul.f32 %v1744_v42, %v1305_v54 }
 0xaae   : > { %1314 = vrot.lane.b32.xlu1 %v1307_v55, %s1761_s8  ;;  %1320 = vrot.lane.b32.xlu0 %v1204_v47, %s1763_s25 }
 0xab2   : > { %1326 = vrot.lane.b32.xlu1 %v1301_v50, %s1763_s25 }
 0xb1c   : > { %v1310_v56 = vpop.permute.xlu0 %1309 }
 0xb1d   : > { %1312 = vst.msk [vmem:[%s1818_s11 + $0x6] sm:$0x3] %vm693_vm4, %v1310_v56  ;;  %1318 = vst.msk [vmem:[#allocation2] sm:$0x3] %vm693_vm4, %v1310_v56 }
 0xb20   : > { %v1315_v57 = vpop.permute.xlu1 %1314  ;;  %v1321_v22 = vpop.permute.xlu0 %1320 }
 0xb21   : > { %1317 = vst.msk [vmem:[%s1823_s14] sm:$0x3] %vm693_vm4, %v1315_v57  ;;  %1324 = vst.msk [vmem:[#allocation2 + $0x2] sm:$0x3] %vm693_vm4, %v1315_v57 }
 0xb22   : > { %1323 = vst.msk [vmem:[#allocation3] sm:$0x3] %vm693_vm4, %v1321_v22 }
 0xb24   : > { %v1327_v18 = vpop.permute.xlu1 %1326 }
 0xb25   : > { %1329 = vst.msk [vmem:[#allocation3 + $0x2] sm:$0x3] %vm693_vm4, %v1327_v18 }
 0xb26 PF: > { %s17_s21 = sadd.s32 1, %s1755_s21  }
 0xb27   : > { %p14_p6 = scmp.ge.s32.totalorder %s17_s21, 4  }
 0xb29   :  { %16 = sbr.rel (!%p14_p6) target bundleno = 1 (0x1), region = 94 }

// kernel: bidirectional_lstm_encoder.3
= control target key start
LH: loop header
LB: loop body
LE: loop exit
PB: predicated region body
PF: predicated region fallthrough
CT: control target
= control target key end

     0   :  { %s1822_s21 = smov 0   ;;  %s2045_s0 = inlined_call_operand.vmem [shape: f32[16,32], index: 0, kind: input, shape index: {}]   ;;  %s2046_s1 = inlined_call_operand.vmem [shape: f32[16,32], index: 1, kind: input, shape index: {}]   ;;  %s2047_s2 = inlined_call_operand.vmem [shape: f32[2,32,128], index: 2, kind: input, shape index: {}]   ;;  %s2048_s3 = inlined_call_operand.vmem [shape: f32[2,32,128], index: 3, kind: input, shape index: {}]   ;;  %s2049_s4 = inlined_call_operand.vmem [shape: f32[2,1,128], index: 4, kind: input, shape index: {}]   ;;  %s2050_s5 = inlined_call_operand.vmem [shape: f32[16,32], index: 5, kind: output, shape index: {0}]   ;;  %s2051_s6 = inlined_call_operand.vmem [shape: f32[16,32], index: 6, kind: output, shape index: {1}]  }
   0x1 LB: > { %s1432_s22 = sadd.s32 4294967295, %s1778_s21   ;;  %p1436_p0 = scmp.ge.s32.totalorder %s1778_s21, 1  ;;  %s1778_s21 = sphi %s1822_s21, %s17_s21  }
   0x2   : > { %p229_p1 = scmp.lt.s32.totalorder %s1778_s21, 3 }
   0x4   : > { %p230_p2 = pnand %p1436_p0, %p229_p1 }
   0x5   : > { %p267_p3 = scmp.lt.s32.totalorder (!%p230_p2), %s1432_s22, 1  ;;  %s271_s23 = ssub.s32 (!%p230_p2), 1, %s1432_s22 }
   0x6   : > { %233 = sbr.rel (%p230_p2) target bundleno = 2858 (0xb2a), region = 40  ;;  %p272_p4 = scmp.lt.s32.totalorder (!%p230_p2), %s271_s23, 1 }
   0x7   : > { %p1441_p5 = scmp.ne.s32.totalorder (!%p230_p2), %s1432_s22, 0 }
   0xd   : > { %s268_s24 = scalar_select %p267_p3, %s1432_s22, 1 }
   0xe   : > { %s2053_s23 = smov (!%p272_p4, %s271_s23), 1  ;;  %290 = sbr.rel (%p1441_p5) target bundleno = 21 (0x15), region = 44 }
   0xf   : > { %s1437_s25 = sshll.u32 %s268_s24, 3  ;;  %s1438_s29 = sshll.u32 %s2053_s23, 3  ;;  %vm291_vm0 = vcmask (!%p1441_p5), 254976   ;;  %v1780_v0 = vmov (!%p1441_p5), 0.0  }
  0x10   : > { %s1833_s28 = scalar_lea.vmem %s2045_s0, %s1437_s25  ;;  %s1838_s8 = scalar_lea.vmem %s2046_s1, %s1438_s29  ;;  %292 = vst.msk [vmem:[#allocation2] sm:$0x3] (!%p1441_p5), %vm291_vm0, %v1780_v0  ;;  %293 = vst.msk [vmem:[#allocation2 + $0x2] sm:$0x3] (!%p1441_p5), %vm291_vm0, %v1780_v0 }
  0x11   : > { %s1843_s11 = scalar_lea.vmem %s2050_s5, %s1437_s25  ;;  %s1848_s14 = scalar_lea.vmem %s2051_s6, %s1438_s29  ;;  %294 = vst.msk [vmem:[#allocation3] sm:$0x3] (!%p1441_p5), %vm291_vm0, %v1780_v0  ;;  %295 = vst.msk [vmem:[#allocation3 + $0x2] sm:$0x3] (!%p1441_p5), %vm291_vm0, %v1780_v0 }
  0x15 PF: > { %v296_v1 = vld [vmem:[%s2047_s2] sm:$0xff]  ;;  %v297_v2 = vld [vmem:[%s2047_s2 + $0x8] sm:$0xff]  ;;  %v1781_v4 = vmov 0.0|0.0   ;;  %v298_v7 = vld [vmem:[%s2047_s2 + $0x10] sm:$0xff]  ;;  %vm1782_vm1 = vmmov 0   ;;  %v1783_v10 = vmov 0.0  }
  0x16   : > { %v1442_v3 = vld [vmem:[%s2047_s2 + $0x20] sm:$0xff]  ;;  %1633 = vmatprep.subr.bf16.mxu0 %v1781_v4  ;;  %v1634_v5 = vpack.c.bf16 %v297_v2, %v296_v1  ;;  %1639 = vmatprep.subr.bf16.mxu1 %v1781_v4  ;;  %v1443_v6 = vld [vmem:[%s2047_s2 + $0x28] sm:$0xff]  ;;  %v299_v8 = vld [vmem:[%s2047_s2 + $0x18] sm:$0xff]  ;;  %vm324_vm2 = vcmask 261120   ;;  %s1784_s20 = smov 32   ;;  %s1785_s10 = smov 64  }
  0x17   : > { %v1640_v9 = vpack.c.bf16 %v1443_v6, %v1442_v3  ;;  %1531 = vmatprep.mubr.msk.f32.mxu0 %vm1782_vm1, %v1783_v10  ;;  %v1444_v11 = vld [vmem:[%s2047_s2 + $0x30] sm:$0xff]  ;;  %v1445_v12 = vld [vmem:[%s2047_s2 + $0x38] sm:$0xff]  ;;  %1542 = vmatprep.mubr.msk.f32.mxu1 %vm1782_vm1, %v1783_v10  ;;  %v1637_v13 = vpack.c.bf16 %v299_v8, %v298_v7  ;;  %v305_v15 = vld [vmem:[%s2048_s3] sm:$0xff]  ;;  %vm696_vm3 = vcmask 254976   ;;  %s1786_s12 = smov 96  }
  0x18   : > { %1635 = vmatpush3.bf16.msra.mxu0 %v1634_v5  ;;  %v1643_v14 = vpack.c.bf16 %v1445_v12, %v1444_v11  ;;  %v306_v16 = vld [vmem:[%s2048_s3 + $0x8] sm:$0xff]  ;;  %v1446_v17 = vld [vmem:[%s2048_s3 + $0x20] sm:$0xff]  ;;  %v307_v23 = vld [vmem:[%s2048_s3 + $0x10] sm:$0xff] }
  0x19   : > { %1636 = vmatprep.subr.bf16.mxu0 %v1781_v4  ;;  %1641 = vmatpush3.bf16.msra.mxu1 %v1640_v9  ;;  %v1447_v18 = vld [vmem:[%s2048_s3 + $0x28] sm:$0xff]  ;;  %v481_v19 = vld [vmem:[#allocation3] sm:$0x3]  ;;  %v1895_v21 = vpack.c.bf16 %v306_v16, %v305_v15  ;;  %v308_v24 = vld [vmem:[%s2048_s3 + $0x18] sm:$0xff] }
  0x1a   : > { %1642 = vmatprep.subr.bf16.mxu1 %v1781_v4  ;;  %v317_v20 = vld [vmem:[%s1833_s28] sm:$0xff]  ;;  %570 = vrot.lane.b32.xlu1 %v481_v19, %s1784_s20  ;;  %v1906_v25 = vpack.c.bf16 %v1447_v18, %v1446_v17  ;;  %v1448_v26 = vld [vmem:[%s2048_s3 + $0x30] sm:$0xff]  ;;  %v1449_v27 = vld [vmem:[%s2048_s3 + $0x38] sm:$0xff]  ;;  %v1918_v28 = vpack.c.bf16 %v308_v24, %v307_v23 }
  0x1b   : > { %v399_v22 = vld [vmem:[%s1838_s8] sm:$0xff]  ;;  %v1922_v30 = vpack.c.bf16 %v1449_v27, %v1448_v26 }
  0x1c   : > { %1638 = vmatpush3.bf16.msra.mxu0 %v1637_v13  ;;  %v485_v29 = vld [vmem:[#allocation3 + $0x2] sm:$0x3]  ;;  %v480_v31 = vld [vmem:[#allocation2] sm:$0x3]  ;;  %v483_v32 = vld [vmem:[#allocation2 + $0x2] sm:$0x3] }
  0x1d   : > { %1644 = vmatpush3.bf16.msra.mxu1 %v1643_v14  ;;  %1645 = vmatprep.subr.bf16.mxu0 %v1781_v4  ;;  %v1451_v33 = vld [vmem:[%s2049_s4] ss:$0 sm:$0xff]  ;;  %v1453_v34 = vld [vmem:[%s2049_s4 + $0x1] ss:$0 sm:$0xff] }
  0x1e   : > { %1651 = vmatprep.subr.bf16.mxu1 %v1781_v4  ;;  %672 = vrot.lane.b32.xlu1 %v485_v29, %s1784_s20 }
  0x1f   : > { %1532 = vmatmul.mubr.msk.f32.vlgmr.msra.gmra.mrb[0].mxu0 %vm324_vm2, %v317_v20 }
  0x20   : > { %1647 = vmatpush3.bf16.msra.mxu0 %v1895_v21  ;;  %1543 = vmatmul.mubr.msk.f32.vlgmr.msra.gmra.mrb[0].mxu1 %vm324_vm2, %v399_v22 }
  0x21   : > { %1648 = vmatprep.subr.bf16.mxu0 %v1781_v4  ;;  %1653 = vmatpush3.bf16.msra.mxu1 %v1906_v25 }
  0x22   : > { %1553 = vmatprep.mubr.msk.f32.mxu0 %vm1782_vm1, %v1783_v10  ;;  %1654 = vmatprep.subr.bf16.mxu1 %v1781_v4 }
  0x23   : > { %1564 = vmatprep.mubr.msk.f32.mxu1 %vm1782_vm1, %v1783_v10 }
  0x24   : > { %1650 = vmatpush3.bf16.msra.mxu0 %v1918_v28 }
  0x25   : > { %1656 = vmatpush3.bf16.msra.mxu1 %v1922_v30  ;;  %1657 = vmatprep.subr.bf16.mxu0 %v1781_v4 }
  0x26   : > { %1663 = vmatprep.subr.bf16.mxu1 %v1781_v4 }
  0x27   : > { %1554 = vmatmul.mubr.msk.f32.vlgmr.msra.gmra.mrb[2].mxu0 %vm324_vm2, %v480_v31 }
  0x28   : > { %1565 = vmatmul.mubr.msk.f32.vlgmr.msra.gmra.mrb[2].mxu1 %vm324_vm2, %v483_v32  ;;  %1659 = vmatpush3.bf16.msra.mxu0 %v1895_v21 }
  0x29   : > { %1660 = vmatprep.subr.bf16.mxu0 %v1781_v4  ;;  %1665 = vmatpush3.bf16.msra.mxu1 %v1906_v25 }
  0x2a   : > { %1575 = vmatprep.mubr.msk.f32.mxu0 %vm1782_vm1, %v1783_v10  ;;  %1666 = vmatprep.subr.bf16.mxu1 %v1781_v4 }
  0x2b   : > { %1586 = vmatprep.mubr.msk.f32.mxu1 %vm1782_vm1, %v1783_v10 }
  0x2c   : > { %1662 = vmatpush3.bf16.msra.mxu0 %v1918_v28 }
  0x2d   : > { %1668 = vmatpush3.bf16.msra.mxu1 %v1922_v30  ;;  %1669 = vmatprep.subr.bf16.mxu0 %v1781_v4 }
  0x2e   : > { %1675 = vmatprep.subr.bf16.mxu1 %v1781_v4 }
  0x8c   : > { %v571_v63 = vpop.permute.xlu1 %570 }
  0x90   : > { %v673_v1 = vpop.permute.xlu1 %672 }
  0xf2   : > { %v394_v35 = vpop.f32.mrb[0].mxu0 }
  0xf3   : > { %v395_v36 = vadd.f32 %v1451_v33, %v394_v35  ;;  %v1533_v37 = vpop.f32.mrb[1].mxu0  ;;  %v475_v38 = vpop.f32.mrb[0].mxu1 }
  0xf4   : > { %v476_v39 = vadd.f32 %v1453_v34, %v475_v38  ;;  %v1544_v40 = vpop.f32.mrb[1].mxu1 }
  0xf5   : > { %398 = vst [vmem:[#allocation4] sm:$0xff] %v395_v36 }
  0xf6   : > { %479 = vst [vmem:[#allocation5] sm:$0xff] %v476_v39 }
  0xfa   : > { %v557_v41 = vpop.f32.mrb[2].mxu0 }
  0xfb   : > { %v1555_v42 = vpop.f32.mrb[3].mxu0  ;;  %v659_v43 = vpop.f32.mrb[2].mxu1 }
  0xfc   : > { %v486_v44 = vld [vmem:[#allocation4] sm:$0x3]  ;;  %v1566_v45 = vpop.f32.mrb[3].mxu1  ;;  %v703_v17 = vld [vmem:[#allocation4 + $0x2] sm:$0x3] }
  0xfd   : > { %v561_v46 = vadd.f32 %v557_v41, %v486_v44  ;;  %v487_v47 = vld [vmem:[#allocation5 + $0x6] sm:$0x3]  ;;  %v704_v22 = vld [vmem:[#allocation5 + $0x4] sm:$0x3] }
  0xfe   : > { %v663_v48 = vadd.f32 %v659_v43, %v487_v47 }
  0xff   : > { %1708 = vtanh.f32 %v561_v46  ;;  %v1456_v51 = vmul.f32 -1.442695, %v561_v46 }
 0x100   : > { %1710 = vtanh.f32 %v663_v48  ;;  %v1458_v52 = vmul.f32 -1.442695, %v663_v48 }
 0x101   : > { %1712 = vpow2.f32 %v1456_v51 }
 0x102   : > { %1714 = vpow2.f32 %v1458_v52 }
 0x109   : > { %v1709_v49 = vpop.eup %1708 }
 0x10a   : > { %575 = vrot.lane.b32.xlu0 %v1709_v49, %s1785_s10  ;;  %v1711_v50 = vpop.eup %1710 }
 0x10b   : > { %v1713_v53 = vpop.eup %1712 }
 0x10c   : > { %v565_v54 = vadd.f32 1.0, %v1713_v53  ;;  %v1715_v55 = vpop.eup %1714 }
 0x10d   : > { %v667_v56 = vadd.f32 1.0, %v1715_v55 }
 0x10e   : > { %677 = vrot.lane.b32.xlu0 %v1711_v50, %s1785_s10  ;;  %1716 = vrcp.f32 %v565_v54 }
 0x10f   : > { %1718 = vrcp.f32 %v667_v56 }
 0x118   : > { %v1717_v57 = vpop.eup %1716 }
 0x119   : > { %v1719_v60 = vpop.eup %1718  ;;  %v573_v0 = vmul.f32 %v1717_v57, %v571_v63 }
 0x11a   : > { %v675_v5 = vmul.f32 %v1719_v60, %v673_v1 }
 0x17c   : > { %v576_v58 = vpop.permute.xlu0 %575 }
 0x17d   : > { %v578_v59 = vmul.f32 %v1717_v57, %v576_v58 }
 0x17f   : > { %580 = vrot.lane.b32.xlu0 %v578_v59, %s1784_s20 }
 0x180   : > { %v678_v61 = vpop.permute.xlu0 %677 }
 0x181   : > { %v680_v62 = vmul.f32 %v1719_v60, %v678_v61 }
 0x183   : > { %682 = vrot.lane.b32.xlu1 %v680_v62, %s1784_s20 }
 0x1f1   : > { %v581_v2 = vpop.permute.xlu0 %580 }
 0x1f2   : > { %v1958_v3 = vadd.f32 %v581_v2, %v573_v0 }
 0x1f4   : > { %1720 = vtanh.f32 %v1958_v3 }
 0x1f5   : > { %v683_v6 = vpop.permute.xlu1 %682 }
 0x1f6   : > { %v1961_v7 = vadd.f32 %v683_v6, %v675_v5 }
 0x1f8   : > { %1722 = vtanh.f32 %v1961_v7 }
 0x1fe   : > { %v1721_v8 = vpop.eup %1720 }
 0x1ff   : > { %586 = vrot.lane.b32.xlu0 %v1721_v8, %s1785_s10 }
 0x202   : > { %v1723_v9 = vpop.eup %1722 }
 0x203   : > { %688 = vrot.lane.b32.xlu1 %v1723_v9, %s1785_s10 }
 0x271   : > { %v587_v11 = vpop.permute.xlu0 %586 }
 0x272   : > { %v589_v12 = vmul.f32 %v1717_v57, %v587_v11 }
 0x274   : > { %693 = vrot.lane.b32.xlu0 %v589_v12, %s1784_s20 }
 0x275   : > { %v689_v13 = vpop.permute.xlu1 %688 }
 0x276   : > { %v691_v14 = vmul.f32 %v1719_v60, %v689_v13  ;;  %v910_v60 = vld [vmem:[#allocation5 + $0x2] sm:$0x3] }
 0x278   : > { %699 = vrot.lane.b32.xlu1 %v691_v14, %s1784_s20 }
 0x2e6   : > { %v694_v15 = vpop.permute.xlu0 %693 }
 0x2e7   : > { %697 = vst.msk [vmem:[%s1843_s11] sm:$0x3] %vm696_vm3, %v694_v15  ;;  %1576 = vmatmul.mubr.msk.f32.vlgmr.msra.gmra.mrb[4].mxu0 %vm324_vm2, %v694_v15 }
 0x2e8   : > { %1671 = vmatpush3.bf16.msra.mxu0 %v1895_v21  ;;  %1597 = vmatprep.mubr.msk.f32.mxu0 %vm1782_vm1, %v1783_v10 }
 0x2e9   : > { %1672 = vmatprep.subr.bf16.mxu0 %v1781_v4 }
 0x2ea   : > { %v700_v16 = vpop.permute.xlu1 %699 }
 0x2eb   : > { %702 = vst.msk [vmem:[%s1848_s14 + $0x6] sm:$0x3] %vm696_vm3, %v700_v16  ;;  %1587 = vmatmul.mubr.msk.f32.vlgmr.msra.gmra.mrb[4].mxu1 %vm324_vm2, %v700_v16 }
 0x2ec   : > { %1674 = vmatpush3.bf16.msra.mxu0 %v1918_v28  ;;  %1677 = vmatpush3.bf16.msra.mxu1 %v1906_v25 }
 0x2ed   : > { %1678 = vmatprep.subr.bf16.mxu1 %v1781_v4  ;;  %1608 = vmatprep.mubr.msk.f32.mxu1 %vm1782_vm1, %v1783_v10 }
 0x2ee   : > { %1681 = vmatprep.subr.bf16.mxu0 %v1781_v4 }
 0x2f0   : > { %1680 = vmatpush3.bf16.msra.mxu1 %v1922_v30 }
 0x2f1   : > { %1687 = vmatprep.subr.bf16.mxu1 %v1781_v4 }
 0x3ba   : > { %v773_v18 = vpop.f32.mrb[4].mxu0 }
 0x3bb   : > { %v777_v19 = vadd.f32 %v773_v18, %v703_v17  ;;  %v1577_v20 = vpop.f32.mrb[5].mxu0 }
 0x3bd   : > { %1724 = vtanh.f32 %v777_v19  ;;  %v1460_v31 = vmul.f32 -1.442695, %v777_v19 }
 0x3be   : > { %v870_v23 = vpop.f32.mrb[4].mxu1 }
 0x3bf   : > { %v874_v24 = vadd.f32 %v870_v23, %v704_v22  ;;  %v1588_v26 = vpop.f32.mrb[5].mxu1 }
 0x3c1   : > { %1726 = vtanh.f32 %v874_v24  ;;  %v1462_v32 = vmul.f32 -1.442695, %v874_v24 }
 0x3c2   : > { %1728 = vpow2.f32 %v1460_v31 }
 0x3c3   : > { %1730 = vpow2.f32 %v1462_v32 }
 0x3c7   : > { %v1725_v27 = vpop.eup %1724 }
 0x3c8   : > { %787 = vrot.lane.b32.xlu0 %v1725_v27, %s1785_s10  ;;  %v1115_v27 = vld [vmem:[#allocation4 + $0x6] sm:$0x3] }
 0x3cb   : > { %v1727_v29 = vpop.eup %1726 }
 0x3cc   : > { %884 = vrot.lane.b32.xlu1 %v1727_v29, %s1785_s10  ;;  %v1729_v33 = vpop.eup %1728 }
 0x3cd   : > { %v781_v34 = vadd.f32 1.0, %v1729_v33  ;;  %v1731_v35 = vpop.eup %1730  ;;  %v1116_v33 = vld [vmem:[#allocation5] sm:$0x3] }
 0x3ce   : > { %v878_v36 = vadd.f32 1.0, %v1731_v35 }
 0x3cf   : > { %1732 = vrcp.f32 %v781_v34 }
 0x3d0   : > { %1734 = vrcp.f32 %v878_v36 }
 0x3d9   : > { %v1733_v37 = vpop.eup %1732 }
 0x3da   : > { %v1735_v40 = vpop.eup %1734  ;;  %v785_v43 = vmul.f32 %v1733_v37, %v1958_v3 }
 0x3db   : > { %v882_v46 = vmul.f32 %v1735_v40, %v1961_v7 }
 0x43a   : > { %v788_v38 = vpop.permute.xlu0 %787 }
 0x43b   : > { %v790_v39 = vmul.f32 %v1733_v37, %v788_v38 }
 0x43d   : > { %792 = vrot.lane.b32.xlu0 %v790_v39, %s1784_s20 }
 0x43e   : > { %v885_v41 = vpop.permute.xlu1 %884 }
 0x43f   : > { %v887_v42 = vmul.f32 %v1735_v40, %v885_v41 }
 0x441   : > { %889 = vrot.lane.b32.xlu1 %v887_v42, %s1784_s20 }
 0x4af   : > { %v793_v44 = vpop.permute.xlu0 %792 }
 0x4b0   : > { %v795_v45 = vadd.f32 %v793_v44, %v785_v43 }
 0x4b2   : > { %1736 = vtanh.f32 %v795_v45 }
 0x4b3   : > { %v890_v47 = vpop.permute.xlu1 %889 }
 0x4b4   : > { %v892_v48 = vadd.f32 %v890_v47, %v882_v46 }
 0x4b6   : > { %1738 = vtanh.f32 %v892_v48 }
 0x4bc   : > { %v1737_v49 = vpop.eup %1736 }
 0x4bd   : > { %798 = vrot.lane.b32.xlu0 %v1737_v49, %s1785_s10 }
 0x4c0   : > { %v1739_v50 = vpop.eup %1738 }
 0x4c1   : > { %895 = vrot.lane.b32.xlu1 %v1739_v50, %s1785_s10 }
 0x52f   : > { %v799_v51 = vpop.permute.xlu0 %798 }
 0x530   : > { %v801_v52 = vmul.f32 %v1733_v37, %v799_v51 }
 0x532   : > { %900 = vrot.lane.b32.xlu0 %v801_v52, %s1784_s20 }
 0x533   : > { %v896_v53 = vpop.permute.xlu1 %895 }
 0x534   : > { %v898_v54 = vmul.f32 %v1735_v40, %v896_v53 }
 0x536   : > { %905 = vrot.lane.b32.xlu1 %v898_v54, %s1784_s20 }
 0x5a4   : > { %v901_v55 = vpop.permute.xlu0 %900 }
 0x5a5   : > { %903 = vst.msk [vmem:[%s1843_s11 + $0x2] sm:$0x3] %vm696_vm3, %v901_v55  ;;  %1598 = vmatmul.mubr.msk.f32.vlgmr.msra.gmra.mrb[6].mxu0 %vm324_vm2, %v901_v55 }
 0x5a6   : > { %1683 = vmatpush3.bf16.msra.mxu0 %v1895_v21  ;;  %1619 = vmatprep.mubr.msk.f32.mxu0 %vm1782_vm1, %v1783_v10  ;;  %v909_v21 = vld [vmem:[#allocation4 + $0x4] sm:$0x3] }
 0x5a7   : > { %1684 = vmatprep.subr.bf16.mxu0 %v1781_v4 }
 0x5a8   : > { %v906_v56 = vpop.permute.xlu1 %905 }
 0x5a9   : > { %908 = vst.msk [vmem:[%s1848_s14 + $0x4] sm:$0x3] %vm696_vm3, %v906_v56  ;;  %1609 = vmatmul.mubr.msk.f32.vlgmr.msra.gmra.mrb[6].mxu1 %vm324_vm2, %v906_v56 }
 0x5aa   : > { %1686 = vmatpush3.bf16.msra.mxu0 %v1918_v28  ;;  %1689 = vmatpush3.bf16.msra.mxu1 %v1906_v25 }
 0x5ab   : > { %1690 = vmatprep.subr.bf16.mxu1 %v1781_v4  ;;  %1630 = vmatprep.mubr.msk.f32.mxu1 %vm1782_vm1, %v1783_v10 }
 0x5ae   : > { %1692 = vmatpush3.bf16.msra.mxu1 %v1922_v30 }
 0x678   : > { %v979_v57 = vpop.f32.mrb[6].mxu0 }
 0x679   : > { %v983_v58 = vadd.f32 %v979_v57, %v909_v21  ;;  %v1599_v59 = vpop.f32.mrb[7].mxu0 }
 0x67b   : > { %1740 = vtanh.f32 %v983_v58  ;;  %v1464_v4 = vmul.f32 -1.442695, %v983_v58 }
 0x67c   : > { %v1076_v61 = vpop.f32.mrb[6].mxu1 }
 0x67d   : > { %v1080_v62 = vadd.f32 %v1076_v61, %v910_v60  ;;  %v1610_v63 = vpop.f32.mrb[7].mxu1 }
 0x67f   : > { %1742 = vtanh.f32 %v1080_v62  ;;  %v1466_v10 = vmul.f32 -1.442695, %v1080_v62 }
 0x680   : > { %1744 = vpow2.f32 %v1464_v4 }
 0x681   : > { %1746 = vpow2.f32 %v1466_v10 }
 0x685   : > { %v1741_v28 = vpop.eup %1740 }
 0x686   : > { %993 = vrot.lane.b32.xlu0 %v1741_v28, %s1785_s10 }
 0x689   : > { %v1743_v25 = vpop.eup %1742 }
 0x68a   : > { %1090 = vrot.lane.b32.xlu1 %v1743_v25, %s1785_s10  ;;  %v1745_v30 = vpop.eup %1744 }
 0x68b   : > { %v987_v0 = vadd.f32 1.0, %v1745_v30  ;;  %v1747_v1 = vpop.eup %1746 }
 0x68c   : > { %v1084_v2 = vadd.f32 1.0, %v1747_v1 }
 0x68d   : > { %1748 = vrcp.f32 %v987_v0 }
 0x68e   : > { %1750 = vrcp.f32 %v1084_v2 }
 0x697   : > { %v1749_v3 = vpop.eup %1748 }
 0x698   : > { %v1751_v7 = vpop.eup %1750  ;;  %v991_v11 = vmul.f32 %v1749_v3, %v795_v45 }
 0x699   : > { %v1088_v14 = vmul.f32 %v1751_v7, %v892_v48 }
 0x6f8   : > { %v994_v5 = vpop.permute.xlu0 %993 }
 0x6f9   : > { %v996_v6 = vmul.f32 %v1749_v3, %v994_v5 }
 0x6fb   : > { %998 = vrot.lane.b32.xlu0 %v996_v6, %s1784_s20 }
 0x6fc   : > { %v1091_v8 = vpop.permute.xlu1 %1090 }
 0x6fd   : > { %v1093_v9 = vmul.f32 %v1751_v7, %v1091_v8 }
 0x6ff   : > { %1095 = vrot.lane.b32.xlu1 %v1093_v9, %s1784_s20 }
 0x76d   : > { %v999_v12 = vpop.permute.xlu0 %998 }
 0x76e   : > { %v1001_v13 = vadd.f32 %v999_v12, %v991_v11 }
 0x770   : > { %1752 = vtanh.f32 %v1001_v13 }
 0x771   : > { %v1096_v15 = vpop.permute.xlu1 %1095 }
 0x772   : > { %v1098_v16 = vadd.f32 %v1096_v15, %v1088_v14 }
 0x774   : > { %1754 = vtanh.f32 %v1098_v16 }
 0x77a   : > { %v1753_v17 = vpop.eup %1752 }
 0x77b   : > { %1004 = vrot.lane.b32.xlu0 %v1753_v17, %s1785_s10 }
 0x77e   : > { %v1755_v18 = vpop.eup %1754 }
 0x77f   : > { %1101 = vrot.lane.b32.xlu1 %v1755_v18, %s1785_s10 }
 0x7ed   : > { %v1005_v19 = vpop.permute.xlu0 %1004 }
 0x7ee   : > { %v1007_v20 = vmul.f32 %v1749_v3, %v1005_v19 }
 0x7f0   : > { %1106 = vrot.lane.b32.xlu0 %v1007_v20, %s1784_s20 }
 0x7f1   : > { %v1102_v22 = vpop.permute.xlu1 %1101 }
 0x7f2   : > { %v1104_v23 = vmul.f32 %v1751_v7, %v1102_v22 }
 0x7f4   : > { %1111 = vrot.lane.b32.xlu1 %v1104_v23, %s1784_s20 }
 0x862   : > { %v1107_v24 = vpop.permute.xlu0 %1106 }
 0x863   : > { %1109 = vst.msk [vmem:[%s1843_s11 + $0x4] sm:$0x3] %vm696_vm3, %v1107_v24  ;;  %1620 = vmatmul.mubr.msk.f32.vlgmr.msra.gmra.mrb[8].mxu0 %vm324_vm2, %v1107_v24 }
 0x866   : > { %v1112_v26 = vpop.permute.xlu1 %1111 }
 0x867   : > { %1114 = vst.msk [vmem:[%s1848_s14 + $0x2] sm:$0x3] %vm696_vm3, %v1112_v26  ;;  %1631 = vmatmul.mubr.msk.f32.vlgmr.msra.gmra.mrb[8].mxu1 %vm324_vm2, %v1112_v26 }
 0x936   : > { %v1185_v29 = vpop.f32.mrb[8].mxu0 }
 0x937   : > { %v1189_v31 = vadd.f32 %v1185_v29, %v1115_v27  ;;  %v1621_v32 = vpop.f32.mrb[9].mxu0 }
 0x939   : > { %1756 = vtanh.f32 %v1189_v31  ;;  %v1468_v39 = vmul.f32 -1.442695, %v1189_v31 }
 0x93a   : > { %v1282_v34 = vpop.f32.mrb[8].mxu1 }
 0x93b   : > { %v1286_v35 = vadd.f32 %v1282_v34, %v1116_v33  ;;  %v1632_v36 = vpop.f32.mrb[9].mxu1 }
 0x93d   : > { %1758 = vtanh.f32 %v1286_v35  ;;  %v1470_v40 = vmul.f32 -1.442695, %v1286_v35 }
 0x93e   : > { %1760 = vpow2.f32 %v1468_v39 }
 0x93f   : > { %1762 = vpow2.f32 %v1470_v40 }
 0x943   : > { %v1757_v37 = vpop.eup %1756 }
 0x944   : > { %1199 = vrot.lane.b32.xlu0 %v1757_v37, %s1785_s10 }
 0x947   : > { %v1759_v38 = vpop.eup %1758 }
 0x948   : > { %1296 = vrot.lane.b32.xlu1 %v1759_v38, %s1785_s10  ;;  %v1761_v41 = vpop.eup %1760 }
 0x949   : > { %v1193_v42 = vadd.f32 1.0, %v1761_v41  ;;  %v1763_v43 = vpop.eup %1762 }
 0x94a   : > { %v1290_v44 = vadd.f32 1.0, %v1763_v43 }
 0x94b   : > { %1764 = vrcp.f32 %v1193_v42 }
 0x94c   : > { %1766 = vrcp.f32 %v1290_v44 }
 0x955   : > { %v1765_v45 = vpop.eup %1764 }
 0x956   : > { %v1767_v48 = vpop.eup %1766  ;;  %v1197_v51 = vmul.f32 %v1765_v45, %v1001_v13 }
 0x957   : > { %v1294_v54 = vmul.f32 %v1767_v48, %v1098_v16 }
 0x9b6   : > { %v1200_v46 = vpop.permute.xlu0 %1199 }
 0x9b7   : > { %v1202_v47 = vmul.f32 %v1765_v45, %v1200_v46 }
 0x9b9   : > { %1204 = vrot.lane.b32.xlu0 %v1202_v47, %s1784_s20 }
 0x9ba   : > { %v1297_v49 = vpop.permute.xlu1 %1296 }
 0x9bb   : > { %v1299_v50 = vmul.f32 %v1767_v48, %v1297_v49 }
 0x9bd   : > { %1301 = vrot.lane.b32.xlu1 %v1299_v50, %s1784_s20 }
 0xa2b   : > { %v1205_v52 = vpop.permute.xlu0 %1204 }
 0xa2c   : > { %v1207_v53 = vadd.f32 %v1205_v52, %v1197_v51 }
 0xa2e   : > { %1768 = vtanh.f32 %v1207_v53 }
 0xa2f   : > { %v1302_v55 = vpop.permute.xlu1 %1301 }
 0xa30   : > { %v1304_v56 = vadd.f32 %v1302_v55, %v1294_v54 }
 0xa32   : > { %1770 = vtanh.f32 %v1304_v56 }
 0xa38   : > { %v1769_v21 = vpop.eup %1768 }
 0xa39   : > { %1210 = vrot.lane.b32.xlu0 %v1769_v21, %s1785_s10 }
 0xa3c   : > { %v1771_v57 = vpop.eup %1770 }
 0xa3d   : > { %1307 = vrot.lane.b32.xlu1 %v1771_v57, %s1785_s10 }
 0xaab   : > { %v1211_v58 = vpop.permute.xlu0 %1210 }
 0xaac   : > { %v1213_v59 = vmul.f32 %v1765_v45, %v1211_v58 }
 0xaae   : > { %1312 = vrot.lane.b32.xlu0 %v1213_v59, %s1784_s20 }
 0xaaf   : > { %v1308_v60 = vpop.permute.xlu1 %1307 }
 0xab0   : > { %v1310_v61 = vmul.f32 %v1767_v48, %v1308_v60 }
 0xab2   : > { %1317 = vrot.lane.b32.xlu1 %v1310_v61, %s1784_s20  ;;  %1323 = vrot.lane.b32.xlu0 %v1207_v53, %s1786_s12 }
 0xab6   : > { %1329 = vrot.lane.b32.xlu1 %v1304_v56, %s1786_s12 }
 0xb20   : > { %v1313_v62 = vpop.permute.xlu0 %1312 }
 0xb21   : > { %1315 = vst.msk [vmem:[%s1843_s11 + $0x6] sm:$0x3] %vm696_vm3, %v1313_v62  ;;  %1321 = vst.msk [vmem:[#allocation2] sm:$0x3] %vm696_vm3, %v1313_v62 }
 0xb24   : > { %v1318_v63 = vpop.permute.xlu1 %1317  ;;  %v1324_v28 = vpop.permute.xlu0 %1323 }
 0xb25   : > { %1320 = vst.msk [vmem:[%s1848_s14] sm:$0x3] %vm696_vm3, %v1318_v63  ;;  %1327 = vst.msk [vmem:[#allocation2 + $0x2] sm:$0x3] %vm696_vm3, %v1318_v63 }
 0xb26   : > { %1326 = vst.msk [vmem:[#allocation3] sm:$0x3] %vm696_vm3, %v1324_v28 }
 0xb28   : > { %v1330_v25 = vpop.permute.xlu1 %1329 }
 0xb29   : > { %1332 = vst.msk [vmem:[#allocation3 + $0x2] sm:$0x3] %vm696_vm3, %v1330_v25 }
 0xb2a PF: > { %s17_s21 = sadd.s32 1, %s1778_s21  }
 0xb2b   : > { %p14_p6 = scmp.ge.s32.totalorder %s17_s21, 4  }
 0xb2d   :  { %16 = sbr.rel (!%p14_p6) target bundleno = 1 (0x1), region = 94 }

</bundles_post_ra>
